<compile_context>
chip_gen: v7x
topology: tpu7x:2x2x1
jax: 0.10.0
libtpu: 0.0.40
codegen_flags: <defaults>
</compile_context>

<pallas_src>
import functools

import jax
import jax.numpy as jnp
from jax.experimental import pallas as pl
from jax.experimental.pallas import tpu as pltpu

_NEG_LARGE = -1e30  # finite "-inf" so padded columns never poison the softmax


def _scores_kernel(x_ref, wvu_ref, bvu_ref, ww_ref, bw_ref, s_ref, *, d, n_valid):
    """Per-tile gated-attention scores, emitted in (K, tile_n) orientation."""
    # Cast the activation tile to the weight dtype (bf16 by default) so the
    # dominant (tile_n, L) x (L, 2D) matmul runs at the MXU bf16 rate.
    x = x_ref[...].astype(wvu_ref.dtype)                              # (tn, L)
    h = jnp.dot(x, wvu_ref[...], preferred_element_type=jnp.float32)
    h = h + bvu_ref[...]                                              # (tn, 2D) f32
    gated = jnp.tanh(h[:, :d]) * jax.nn.sigmoid(h[:, d:])             # (tn, D)  f32
    # scores^T = Ww . gated^T : contract D of both operands (QK^T pattern),
    # producing (K, tn) directly -> lane-dense output blocks, no transposes.
    s = jax.lax.dot_general(
        ww_ref[...], gated, (((1,), (1,)), ((), ())),
        preferred_element_type=jnp.float32)                           # (K, tn)
    s = s + bw_ref[...]
    # Mask columns belonging to the (possibly partial) last x tile so padded
    # instances behave as -inf scores for every downstream consumer.
    tile_n = s.shape[1]
    col = (pl.program_id(0) * tile_n
           + jax.lax.broadcasted_iota(jnp.int32, s.shape, 1))
    s_ref[...] = jnp.where(col < n_valid, s, jnp.float32(_NEG_LARGE))


def _softmax_reduce_kernel(s_ref, m_ref, l_ref):
    """Online (max, sum-exp) over the instance axis, tiled over N."""
    @pl.when(pl.program_id(0) == 0)
    def _():
        m_ref[...] = jnp.full_like(m_ref, _NEG_LARGE)
        l_ref[...] = jnp.zeros_like(l_ref)

    s = s_ref[...]                                                    # (K, tn)
    m_prev = m_ref[...]
    m_new = jnp.maximum(m_prev, jnp.max(s, axis=1, keepdims=True))
    l_ref[...] = (l_ref[...] * jnp.exp(m_prev - m_new)
                  + jnp.sum(jnp.exp(s - m_new), axis=1, keepdims=True))
    m_ref[...] = m_new


def _softmax_norm_kernel(s_ref, m_ref, l_ref, a_ref):
    """Normalize one (K, tile_n) score tile with the global (max, sum-exp)."""
    a_ref[...] = jnp.exp(s_ref[...] - m_ref[...]) / l_ref[...]


def fuse_params(params, compute_dtype=jnp.bfloat16):
    """One-time fusion of the V/U projections into a single lane-dense weight.

    Hoisted out of the per-call path so repeated inference calls do not pay
    the (D, L) transposes / concats again.  `compute_dtype` is what the MXU
    sees for the dominant (L, 2D) matmul (bf16 by default, f32 accumulation).
    """
    wv, bv, wu, bu, ww, bw = (params["wv"], params["bv"], params["wu"],
                              params["bu"], params["ww"], params["bw"])
    d = wv.shape[0]
    k = ww.shape[0]
    w_vu = jnp.concatenate([wv.T, wu.T], axis=1).astype(compute_dtype)  # (L, 2D)
    b_vu = jnp.concatenate([bv, bu]).reshape(1, 2 * d).astype(jnp.float32)
    return dict(
        w_vu=w_vu,
        b_vu=b_vu,
        ww=ww.astype(jnp.float32),       # K=1 score dot is ~1000x smaller: keep f32
        bw=bw.reshape(k, 1).astype(jnp.float32),
    )


def attention_gated(x, fused, *, tile_n=1024, norm=True):
    """DTFD Attention_Gated forward.  x: (N, L).  Returns (K, N) attention."""
    n, l = x.shape
    w_vu, b_vu, ww, bw = fused["w_vu"], fused["b_vu"], fused["ww"], fused["bw"]
    two_d = w_vu.shape[1]
    d = two_d // 2
    k = ww.shape[0]
    assert tile_n % 128 == 0, "tile_n must be a multiple of 128 (lane tiling)"

    # No host-side padding of x: the last (partial) block is masked in-kernel.
    # Output padded to a tile multiple so score stores stay lane-dense.
    n_tiles = pl.cdiv(n, tile_n)
    n_pad = n_tiles * tile_n

    cost = pl.CostEstimate(
        flops=2 * n_pad * l * two_d + 2 * n_pad * d * k,
        transcendentals=2 * n_pad * d,
        bytes_accessed=(x.dtype.itemsize * n * l
                        + w_vu.dtype.itemsize * l * two_d
                        + 4 * (two_d + k * d + k + k * n_pad)),
    )

    scores = pl.pallas_call(
        functools.partial(_scores_kernel, d=d, n_valid=n),
        out_shape=jax.ShapeDtypeStruct((k, n_pad), jnp.float32),
        grid_spec=pltpu.PrefetchScalarGridSpec(
            num_scalar_prefetch=0,
            grid=(n_tiles,),
            in_specs=[
                pl.BlockSpec((tile_n, l), lambda i: (i, 0)),   # x (streamed)
                pl.BlockSpec((l, two_d), lambda i: (0, 0)),    # fused W_vu
                pl.BlockSpec((1, two_d), lambda i: (0, 0)),    # fused bias
                pl.BlockSpec((k, d), lambda i: (0, 0)),        # Ww (K, D)
                pl.BlockSpec((k, 1), lambda i: (0, 0)),        # bw (K, 1)
            ],
            out_specs=pl.BlockSpec((k, tile_n), lambda i: (0, i)),
        ),
        compiler_params=pltpu.CompilerParams(
            dimension_semantics=("parallel",),
            vmem_limit_bytes=32 * 1024 * 1024,
        ),
        cost_estimate=cost,
    )(x, w_vu, b_vu, ww, bw)

    if not norm:                     # isNorm=False path: raw transposed scores
        return scores[:, :n]

    # Tiled two-pass softmax over the instance axis (padded columns already
    # hold -1e30, so no extra masking is needed here).
    m, denom = pl.pallas_call(
        _softmax_reduce_kernel,
        out_shape=(jax.ShapeDtypeStruct((k, 1), jnp.float32),
                   jax.ShapeDtypeStruct((k, 1), jnp.float32)),
        grid_spec=pltpu.PrefetchScalarGridSpec(
            num_scalar_prefetch=0,
            grid=(n_tiles,),
            in_specs=[pl.BlockSpec((k, tile_n), lambda i: (0, i))],
            out_specs=[pl.BlockSpec((k, 1), lambda i: (0, 0)),
                       pl.BlockSpec((k, 1), lambda i: (0, 0))],
        ),
        compiler_params=pltpu.CompilerParams(
            dimension_semantics=("arbitrary",)),
    )(scores)

    attn = pl.pallas_call(
        _softmax_norm_kernel,
        out_shape=jax.ShapeDtypeStruct((k, n_pad), jnp.float32),
        grid_spec=pltpu.PrefetchScalarGridSpec(
            num_scalar_prefetch=0,
            grid=(n_tiles,),
            in_specs=[pl.BlockSpec((k, tile_n), lambda i: (0, i)),
                      pl.BlockSpec((k, 1), lambda i: (0, 0)),
                      pl.BlockSpec((k, 1), lambda i: (0, 0))],
            out_specs=pl.BlockSpec((k, tile_n), lambda i: (0, i)),
        ),
        compiler_params=pltpu.CompilerParams(
            dimension_semantics=("parallel",)),
    )(scores, m, denom)
    return attn[:, :n]


def _init_params(key, l, d, k):
    """PyTorch-Linear-like init, stored in PyTorch (out_features, in) layout."""
    ks = jax.random.split(key, 6)

    def lin(kw, kb, fan_in, fan_out):
        bound = 1.0 / float(fan_in) ** 0.5
        w = jax.random.uniform(kw, (fan_out, fan_in), jnp.float32, -bound, bound)
        b = jax.random.uniform(kb, (fan_out,), jnp.float32, -bound, bound)
        return w, b

    wv, bv = lin(ks[0], ks[1], l, d)
    wu, bu = lin(ks[2], ks[3], l, d)
    ww, bw = lin(ks[4], ks[5], d, k)
    return dict(wv=wv, bv=bv, wu=wu, bu=bu, ww=ww, bw=bw)


def _reference_raw(x, p):
    a_v = jnp.tanh(x @ p["wv"].T + p["bv"])
    a_u = jax.nn.sigmoid(x @ p["wu"].T + p["bu"])
    return ((a_v * a_u) @ p["ww"].T + p["bw"]).T       # (K, N)


def _reference(x, p):
    return jax.nn.softmax(_reference_raw(x, p), axis=1)


if __name__ == "__main__":
    # Module defaults L=512, D=128, K=1; small bag N=300 exercises the
    # multi-tile grid and the in-kernel partial-last-tile masking.
    N, L, D, K = 300, 512, 128, 1

    key = jax.random.PRNGKey(0)
    kx, kp = jax.random.split(key)
    x = jax.random.normal(kx, (N, L), jnp.float32)
    params = _init_params(kp, L, D, K)
    ref = _reference(x, params)
    ref_raw = _reference_raw(x, params)

    # f32 compute path: tight check of semantics (multi-tile + partial tile).
    fused_f32 = fuse_params(params, jnp.float32)
    fwd_small = jax.jit(functools.partial(attention_gated, tile_n=128))
    attn32 = jax.block_until_ready(fwd_small(x, fused_f32))
    assert attn32.shape == (K, N)
    assert jnp.allclose(attn32, ref, atol=1e-5, rtol=1e-4)
    assert jnp.allclose(jnp.sum(attn32, axis=1), 1.0, atol=1e-5)

    # isNorm=False path (raw transposed scores).
    raw = jax.block_until_ready(
        attention_gated(x, fused_f32, tile_n=128, norm=False))
    assert raw.shape == (K, N)
    assert jnp.allclose(raw, ref_raw, atol=1e-4, rtol=1e-3)

    # Default production config: bf16 MXU operands, tile_n=1024 (single tile
    # here, partial block handled by in-kernel masking). Looser tolerance.
    fused_bf16 = fuse_params(params, jnp.bfloat16)
    attn16 = jax.block_until_ready(jax.jit(attention_gated)(x, fused_bf16))
    assert attn16.shape == (K, N)
    assert jnp.allclose(attn16, ref, atol=2e-4, rtol=5e-2)
    assert jnp.allclose(jnp.sum(attn16, axis=1), 1.0, atol=1e-4)

    print("KERNEL_OK")
</pallas_src>

<mosaic_0001>
module attributes {stable_mosaic.version = 11 : i64} {
  func.func @_scores_kernel(%arg0: i32, %arg1: memref<128x512xf32, #tpu.memory_space<vmem>>, %arg2: memref<512x256xf32, #tpu.memory_space<vmem>>, %arg3: memref<1x256xf32, #tpu.memory_space<vmem>>, %arg4: memref<1x128xf32, #tpu.memory_space<vmem>>, %arg5: memref<1x1xf32, #tpu.memory_space<vmem>>, %arg6: memref<1x128xf32, #tpu.memory_space<vmem>>) attributes {dimension_semantics = [#tpu.dimension_semantics<parallel>], iteration_bounds = array<i64: 3>, scalar_prefetch = 0 : i64, scratch_operands = 0 : i64, tpu.core_type = #tpu.core_type<tc>, window_params = [{transform_indices = @transform_0, window_bounds = array<i64: 128, 512>}, {pipeline_mode = #tpu.pipeline_mode<synchronous>, transform_indices = @transform_1, window_bounds = array<i64: 512, 256>}, {pipeline_mode = #tpu.pipeline_mode<synchronous>, transform_indices = @transform_2, window_bounds = array<i64: 1, 256>}, {pipeline_mode = #tpu.pipeline_mode<synchronous>, transform_indices = @transform_3, window_bounds = array<i64: 1, 128>}, {pipeline_mode = #tpu.pipeline_mode<synchronous>, transform_indices = @transform_4, window_bounds = array<i64: 1, 1>}, {transform_indices = @transform_5, window_bounds = array<i64: 1, 128>}]} {
    %c0 = arith.constant 0 : index
    %c0_0 = arith.constant 0 : index
    %0 = vector.load %arg1[%c0, %c0_0] : memref<128x512xf32, #tpu.memory_space<vmem>>, vector<128x512xf32>
    %c0_1 = arith.constant 0 : index
    %c0_2 = arith.constant 0 : index
    %1 = vector.load %arg2[%c0_1, %c0_2] : memref<512x256xf32, #tpu.memory_space<vmem>>, vector<512x256xf32>
    %cst = arith.constant dense<0.000000e+00> : vector<128x256xf32>
    %2 = tpu.matmul %0, %1, %cst {dimension_numbers = #tpu.dot_dimension_numbers<[1], [0], [0], [1], [0, 0, 1, 1], [], []>} : vector<128x512xf32>, vector<512x256xf32>, vector<128x256xf32> -> vector<128x256xf32>
    %c0_3 = arith.constant 0 : index
    %c0_4 = arith.constant 0 : index
    %3 = vector.load %arg3[%c0_3, %c0_4] : memref<1x256xf32, #tpu.memory_space<vmem>>, vector<1x256xf32>
    %4 = vector.broadcast %3 : vector<1x256xf32> to vector<128x256xf32>
    %5 = arith.addf %2, %4 : vector<128x256xf32>
    %6 = vector.extract_strided_slice %5 {offsets = [0, 0], sizes = [128, 128], strides = [1, 1]} : vector<128x256xf32> to vector<128x128xf32>
    %7 = math.tanh %6 : vector<128x128xf32>
    %8 = vector.extract_strided_slice %5 {offsets = [0, 128], sizes = [128, 128], strides = [1, 1]} : vector<128x256xf32> to vector<128x128xf32>
    %9 = arith.negf %8 : vector<128x128xf32>
    %10 = math.exp %9 : vector<128x128xf32>
    %cst_5 = arith.constant 1.000000e+00 : f32
    %11 = vector.broadcast %cst_5 : f32 to vector<128x128xf32>
    %12 = arith.addf %11, %10 : vector<128x128xf32>
    %13 = arith.divf %11, %12 : vector<128x128xf32>
    %14 = arith.mulf %7, %13 : vector<128x128xf32>
    %c0_6 = arith.constant 0 : index
    %c0_7 = arith.constant 0 : index
    %15 = vector.load %arg4[%c0_6, %c0_7] : memref<1x128xf32, #tpu.memory_space<vmem>>, vector<1x128xf32>
    %cst_8 = arith.constant dense<0.000000e+00> : vector<1x128xf32>
    %16 = tpu.matmul %15, %14, %cst_8 {dimension_numbers = #tpu.dot_dimension_numbers<[1], [1], [0], [0], [0, 0, 1, 0], [], []>} : vector<1x128xf32>, vector<128x128xf32>, vector<1x128xf32> -> vector<1x128xf32>
    %c0_9 = arith.constant 0 : index
    %c0_10 = arith.constant 0 : index
    %17 = vector.load %arg5[%c0_9, %c0_10] : memref<1x1xf32, #tpu.memory_space<vmem>>, vector<1x1xf32>
    %18 = vector.broadcast %17 : vector<1x1xf32> to vector<1x128xf32>
    %19 = arith.addf %16, %18 : vector<1x128xf32>
    %c128_i32 = arith.constant 128 : i32
    %20 = arith.muli %arg0, %c128_i32 : i32
    %21 = tpu.iota {dimensions = array<i32: 1>} : vector<1x128xi32>
    %22 = vector.broadcast %20 : i32 to vector<1x128xi32>
    %23 = arith.addi %22, %21 : vector<1x128xi32>
    %c300_i32 = arith.constant 300 : i32
    %24 = vector.broadcast %c300_i32 : i32 to vector<1x128xi32>
    %25 = arith.cmpi slt, %23, %24 : vector<1x128xi32>
    %cst_11 = arith.constant -1.000000e+30 : f32
    %26 = vector.broadcast %cst_11 : f32 to vector<1x128xf32>
    %27 = arith.select %25, %19, %26 : vector<1x128xi1>, vector<1x128xf32>
    %c0_12 = arith.constant 0 : index
    %c0_13 = arith.constant 0 : index
    %28 = vector.load %arg6[%c0_12, %c0_13] : memref<1x128xf32, #tpu.memory_space<vmem>>, vector<1x128xf32>
    tpu.vector_store %arg6[%c0_12, %c0_13], %27 {strides = array<i32>} : memref<1x128xf32, #tpu.memory_space<vmem>>, vector<1x128xf32>,
    return
  }
  func.func @transform_0(%arg0: i32) -> (i32, i32) {
    %c0_i32 = arith.constant 0 : i32
    %c0_i32_0 = arith.constant 0 : i32
    return %arg0, %c0_i32 : i32, i32
  }
  func.func @transform_1(%arg0: i32) -> (i32, i32) {
    %c0_i32 = arith.constant 0 : i32
    %c0_i32_0 = arith.constant 0 : i32
    %c0_i32_1 = arith.constant 0 : i32
    return %c0_i32, %c0_i32_0 : i32, i32
  }
  func.func @transform_2(%arg0: i32) -> (i32, i32) {
    %c0_i32 = arith.constant 0 : i32
    %c0_i32_0 = arith.constant 0 : i32
    %c0_i32_1 = arith.constant 0 : i32
    return %c0_i32, %c0_i32_0 : i32, i32
  }
  func.func @transform_3(%arg0: i32) -> (i32, i32) {
    %c0_i32 = arith.constant 0 : i32
    %c0_i32_0 = arith.constant 0 : i32
    %c0_i32_1 = arith.constant 0 : i32
    return %c0_i32, %c0_i32_0 : i32, i32
  }
  func.func @transform_4(%arg0: i32) -> (i32, i32) {
    %c0_i32 = arith.constant 0 : i32
    %c0_i32_0 = arith.constant 0 : i32
    %c0_i32_1 = arith.constant 0 : i32
    return %c0_i32, %c0_i32_0 : i32, i32
  }
  func.func @transform_5(%arg0: i32) -> (i32, i32) {
    %c0_i32 = arith.constant 0 : i32
    %c0_i32_0 = arith.constant 0 : i32
    return %c0_i32, %arg0 : i32, i32
  }
}

module attributes {stable_mosaic.version = 11 : i64} {
  func.func @_softmax_reduce_kernel(%arg0: i32, %arg1: memref<1x128xf32, #tpu.memory_space<vmem>>, %arg2: memref<1x1xf32, #tpu.memory_space<vmem>>, %arg3: memref<1x1xf32, #tpu.memory_space<vmem>>) attributes {dimension_semantics = [#tpu.dimension_semantics<arbitrary>], iteration_bounds = array<i64: 3>, scalar_prefetch = 0 : i64, scratch_operands = 0 : i64, tpu.core_type = #tpu.core_type<tc>, window_params = [{transform_indices = @transform_0, window_bounds = array<i64: 1, 128>}, {pipeline_mode = #tpu.pipeline_mode<synchronous>, transform_indices = @transform_1, window_bounds = array<i64: 1, 1>}, {pipeline_mode = #tpu.pipeline_mode<synchronous>, transform_indices = @transform_2, window_bounds = array<i64: 1, 1>}]} {
    %c0_i32 = arith.constant 0 : i32
    %0 = arith.cmpi eq, %arg0, %c0_i32 : i32
    %1 = arith.extui %0 : i1 to i32
    %c0_i32_0 = arith.constant 0 : i32
    %2 = arith.cmpi ne, %1, %c0_i32_0 : i32
    scf.if %2 {
      %cst_11 = arith.constant -1.000000e+30 : f32
      %20 = vector.broadcast %cst_11 : f32 to vector<1x1xf32>
      %c0_12 = arith.constant 0 : index
      %c0_13 = arith.constant 0 : index
      %21 = vector.load %arg2[%c0_12, %c0_13] : memref<1x1xf32, #tpu.memory_space<vmem>>, vector<1x1xf32>
      tpu.vector_store %arg2[%c0_12, %c0_13], %20 {strides = array<i32>} : memref<1x1xf32, #tpu.memory_space<vmem>>, vector<1x1xf32>,
      %cst_14 = arith.constant 0.000000e+00 : f32
      %22 = vector.broadcast %cst_14 : f32 to vector<1x1xf32>
      %c0_15 = arith.constant 0 : index
      %c0_16 = arith.constant 0 : index
      %23 = vector.load %arg3[%c0_15, %c0_16] : memref<1x1xf32, #tpu.memory_space<vmem>>, vector<1x1xf32>
      tpu.vector_store %arg3[%c0_15, %c0_16], %22 {strides = array<i32>} : memref<1x1xf32, #tpu.memory_space<vmem>>, vector<1x1xf32>,
    } else {
    }
    %c0 = arith.constant 0 : index
    %c0_1 = arith.constant 0 : index
    %3 = vector.load %arg1[%c0, %c0_1] : memref<1x128xf32, #tpu.memory_space<vmem>>, vector<1x128xf32>
    %c0_2 = arith.constant 0 : index
    %c0_3 = arith.constant 0 : index
    %4 = vector.load %arg2[%c0_2, %c0_3] : memref<1x1xf32, #tpu.memory_space<vmem>>, vector<1x1xf32>
    %cst = arith.constant dense<0xFF800000> : vector<1xf32>
    %5 = vector.multi_reduction <maximumf>, %3, %cst [1] : vector<1x128xf32> to vector<1xf32>
    %6 = vector.shape_cast %5 : vector<1xf32> to vector<1x1xf32>
    %7 = arith.maximumf %4, %6 : vector<1x1xf32>
    %c0_4 = arith.constant 0 : index
    %c0_5 = arith.constant 0 : index
    %8 = vector.load %arg3[%c0_4, %c0_5] : memref<1x1xf32, #tpu.memory_space<vmem>>, vector<1x1xf32>
    %9 = arith.subf %4, %7 : vector<1x1xf32>
    %10 = math.exp %9 : vector<1x1xf32>
    %11 = arith.mulf %8, %10 : vector<1x1xf32>
    %12 = vector.broadcast %7 : vector<1x1xf32> to vector<1x128xf32>
    %13 = arith.subf %3, %12 : vector<1x128xf32>
    %14 = math.exp %13 : vector<1x128xf32>
    %cst_6 = arith.constant dense<0.000000e+00> : vector<1xf32>
    %15 = vector.multi_reduction <add>, %14, %cst_6 [1] : vector<1x128xf32> to vector<1xf32>
    %16 = vector.shape_cast %15 : vector<1xf32> to vector<1x1xf32>
    %17 = arith.addf %11, %16 : vector<1x1xf32>
    %c0_7 = arith.constant 0 : index
    %c0_8 = arith.constant 0 : index
    %18 = vector.load %arg3[%c0_7, %c0_8] : memref<1x1xf32, #tpu.memory_space<vmem>>, vector<1x1xf32>
    tpu.vector_store %arg3[%c0_7, %c0_8], %17 {strides = array<i32>} : memref<1x1xf32, #tpu.memory_space<vmem>>, vector<1x1xf32>,
    %c0_9 = arith.constant 0 : index
    %c0_10 = arith.constant 0 : index
    %19 = vector.load %arg2[%c0_9, %c0_10] : memref<1x1xf32, #tpu.memory_space<vmem>>, vector<1x1xf32>
    tpu.vector_store %arg2[%c0_9, %c0_10], %7 {strides = array<i32>} : memref<1x1xf32, #tpu.memory_space<vmem>>, vector<1x1xf32>,
    return
  }
  func.func @transform_0(%arg0: i32) -> (i32, i32) {
    %c0_i32 = arith.constant 0 : i32
    %c0_i32_0 = arith.constant 0 : i32
    return %c0_i32, %arg0 : i32, i32
  }
  func.func @transform_1(%arg0: i32) -> (i32, i32) {
    %c0_i32 = arith.constant 0 : i32
    %c0_i32_0 = arith.constant 0 : i32
    %c0_i32_1 = arith.constant 0 : i32
    return %c0_i32, %c0_i32_0 : i32, i32
  }
  func.func @transform_2(%arg0: i32) -> (i32, i32) {
    %c0_i32 = arith.constant 0 : i32
    %c0_i32_0 = arith.constant 0 : i32
    %c0_i32_1 = arith.constant 0 : i32
    return %c0_i32, %c0_i32_0 : i32, i32
  }
}

module attributes {stable_mosaic.version = 11 : i64} {
  func.func @_softmax_norm_kernel(%arg0: i32, %arg1: memref<1x128xf32, #tpu.memory_space<vmem>>, %arg2: memref<1x1xf32, #tpu.memory_space<vmem>>, %arg3: memref<1x1xf32, #tpu.memory_space<vmem>>, %arg4: memref<1x128xf32, #tpu.memory_space<vmem>>) attributes {dimension_semantics = [#tpu.dimension_semantics<parallel>], iteration_bounds = array<i64: 3>, scalar_prefetch = 0 : i64, scratch_operands = 0 : i64, tpu.core_type = #tpu.core_type<tc>, window_params = [{transform_indices = @transform_0, window_bounds = array<i64: 1, 128>}, {pipeline_mode = #tpu.pipeline_mode<synchronous>, transform_indices = @transform_1, window_bounds = array<i64: 1, 1>}, {pipeline_mode = #tpu.pipeline_mode<synchronous>, transform_indices = @transform_2, window_bounds = array<i64: 1, 1>}, {transform_indices = @transform_3, window_bounds = array<i64: 1, 128>}]} {
    %c0 = arith.constant 0 : index
    %c0_0 = arith.constant 0 : index
    %0 = vector.load %arg1[%c0, %c0_0] : memref<1x128xf32, #tpu.memory_space<vmem>>, vector<1x128xf32>
    %c0_1 = arith.constant 0 : index
    %c0_2 = arith.constant 0 : index
    %1 = vector.load %arg2[%c0_1, %c0_2] : memref<1x1xf32, #tpu.memory_space<vmem>>, vector<1x1xf32>
    %2 = vector.broadcast %1 : vector<1x1xf32> to vector<1x128xf32>
    %3 = arith.subf %0, %2 : vector<1x128xf32>
    %4 = math.exp %3 : vector<1x128xf32>
    %c0_3 = arith.constant 0 : index
    %c0_4 = arith.constant 0 : index
    %5 = vector.load %arg3[%c0_3, %c0_4] : memref<1x1xf32, #tpu.memory_space<vmem>>, vector<1x1xf32>
    %6 = vector.broadcast %5 : vector<1x1xf32> to vector<1x128xf32>
    %7 = arith.divf %4, %6 : vector<1x128xf32>
    %c0_5 = arith.constant 0 : index
    %c0_6 = arith.constant 0 : index
    %8 = vector.load %arg4[%c0_5, %c0_6] : memref<1x128xf32, #tpu.memory_space<vmem>>, vector<1x128xf32>
    tpu.vector_store %arg4[%c0_5, %c0_6], %7 {strides = array<i32>} : memref<1x128xf32, #tpu.memory_space<vmem>>, vector<1x128xf32>,
    return
  }
  func.func @transform_0(%arg0: i32) -> (i32, i32) {
    %c0_i32 = arith.constant 0 : i32
    %c0_i32_0 = arith.constant 0 : i32
    return %c0_i32, %arg0 : i32, i32
  }
  func.func @transform_1(%arg0: i32) -> (i32, i32) {
    %c0_i32 = arith.constant 0 : i32
    %c0_i32_0 = arith.constant 0 : i32
    %c0_i32_1 = arith.constant 0 : i32
    return %c0_i32, %c0_i32_0 : i32, i32
  }
  func.func @transform_2(%arg0: i32) -> (i32, i32) {
    %c0_i32 = arith.constant 0 : i32
    %c0_i32_0 = arith.constant 0 : i32
    %c0_i32_1 = arith.constant 0 : i32
    return %c0_i32, %c0_i32_0 : i32, i32
  }
  func.func @transform_3(%arg0: i32) -> (i32, i32) {
    %c0_i32 = arith.constant 0 : i32
    %c0_i32_0 = arith.constant 0 : i32
    return %c0_i32, %arg0 : i32, i32
  }
}

</mosaic_0001>

<bundles_post_ra>
// kernel: attention_gated.4
= control target key start
LH: loop header
LB: loop body
LE: loop exit
PB: predicated region body
PF: predicated region fallthrough
CT: control target
= control target key end

     0   :  { %8 = vsyncpa [#allocation3], 0  ;;  %s423_s0 = inlined_call_operand.vmem [shape: f32[1,384], index: 0, kind: input, shape index: {}]   ;;  %s424_s1 = inlined_call_operand.hbm [shape: f32[1,1], index: 1, kind: output, shape index: {0}]   ;;  %s425_s2 = inlined_call_operand.hbm [shape: f32[1,1], index: 2, kind: output, shape index: {1}]  }
   0x1   :  { %9 = vsyncpa [#allocation5], 0  ;;  %s355_s9 = smov 0  }
   0x2 LB: > { %s361_s10 = sadd.s32 4294967295, %s333_s9   ;;  %p229_p0 = scmp.ge.s32.totalorder %s333_s9, 1  ;;  %s333_s9 = sphi %s355_s9, %s15_s9  }
   0x3   : > { %p105_p1 = scmp.lt.s32.totalorder %s333_s9, 4 }
   0x5   : > { %p106_p2 = pnand %p229_p0, %p105_p1 }
   0x6   : > { %p120_p3 = scmp.lt.s32.totalorder (!%p106_p2), %s361_s10, 2  ;;  %p230_p4 = scmp.ne.s32.totalorder (!%p106_p2), %s361_s10, 0 }
   0x7   : > { %109 = sbr.rel (%p106_p2) target bundleno = 475 (0x1db), region = 24 }
   0xe   : > { %s121_s11 = scalar_select %p120_p3, %s361_s10, 2 }
   0xf   : > { %126 = sbr.rel (%p230_p4) target bundleno = 22 (0x16), region = 28  ;;  %vm127_vm0 = vcmask (!%p230_p4), 0   ;;  %v335_v0 = vmov (!%p230_p4), -1e+30   ;;  %v336_v1 = vmov (!%p230_p4), 0.0  }
  0x10   : > { %s122_s14 = scalar_lea.vmem %s423_s0, %s121_s11  ;;  %128 = vst.msk [vmem:[#allocation2] sm:$0x1] (!%p230_p4), %vm127_vm0, %v335_v0  ;;  %129 = vst.msk [vmem:[#allocation4] sm:$0x1] (!%p230_p4), %vm127_vm0, %v336_v1 }
  0x16 PF: > { %v130_v2 = vld [vmem:[%s122_s14] sm:$0x1]  ;;  %vm132_vm1 = vcmask 1040384   ;;  %v337_v4 = vmov 0   ;;  %vm158_vm2 = vcmask 0   ;;  %v147_v9 = vlaneseq  ;;  %p245_p5 = scmp.eq.s32.totalorder %s361_s10, 2 }
  0x17   : > { %v133_v3 = vsel %vm132_vm1, %v130_v2, -inf  ;;  %262 = vset.pattern.permute.xlu0 %v337_v4  ;;  %v131_v5 = vld [vmem:[#allocation2] sm:$0x1]  ;;  %s338_s15 = smov [#allocation2]  }
  0x18   : > { %134 = vmax.xlane.f32.xlu0 %v133_v3  ;;  %v148_v10 = vshrl.u32 %v147_v9, 7  ;;  %s168_s16 = sshll.u32 %s338_s15, 4  ;;  %s169_s16 = int_to_ptr.vmem [resolvable:$true] %s168_s16 }
  0x19   : > { %s267_s17 = scalar_lea.vmem %s169_s16, 16  ;;  %s273_s18 = scalar_lea.vmem %s169_s16, 32 }
  0x1a   : > { %v149_v11 = vsub.s32 0, %v148_v10  ;;  %p268_p6 = scmp.ne.s32.totalorder %s169_s16, %s267_s17  ;;  %p274_p9 = scmp.lt.s32.totalorder %s169_s16, %s169_s16 }
  0x1b   : > { %p275_p10 = scmp.lt.s32.totalorder %s273_s18, %s267_s17 }
  0x1c   : > { %p269_p7 = pnand %p268_p6, %p245_p5 }
  0x1d   : > { %p276_p11 = por %p275_p10, %p274_p9 }
  0x1e   : > { %p270_p8 = pneg %p269_p7 }
  0x20   : > { %p277_p12 = pnand %p276_p11, %p270_p8 }
  0xa5   : > { %v135_v6 = vpop.xlane.xlu0 %134 }
  0xa6   : > { %v136_v7 = vmax.f32 %v131_v5, %v135_v6 }
  0xa8   : > { %v138_v8 = vsub.f32 %v131_v5, %v136_v7  ;;  %144 = vperm.xlu0 %262, %v136_v7   ;;  %160 = vst.msk [vmem:[#allocation2] sm:$0x1] %vm158_vm2, %v136_v7 }
 0x127   : > { %v145_v12 = vpop.permute.xlu0 %144 }
 0x128   : > { %v150_v13 = vrot.slane %v145_v12, %v149_v11 }
 0x12a   : > { %v151_v14 = vsub.f32 %v130_v2, %v150_v13 }
 0x12c   : > { %v152_v15 = vmul.f32 1.442695, %v151_v14 }
 0x12e   : > { %263 = vpow2.f32 %v152_v15 }
 0x138   : > { %v264_v16 = vpop.eup %263 }
 0x139   : > { %v154_v17 = vsel %vm132_vm1, %v264_v16, 0.0 }
 0x13a   : > { %155 = vadd.xlane.f32.xlu1 %v154_v17 }
 0x13b   : > { %280 = shalt.err (!%p277_p12)
}
 0x13c   : > { %s281_s21 = scalar_lea.hbm %s424_s1, 16 }
 0x13d   : > { %p282_p13 = scmp.ne.s32.totalorder %s424_s1, %s281_s21  ;;  %p287_p2 = scmp.lt.u32.totalorder %s281_s21, %s424_s1 }
 0x13f   : > { %p283_p0 = pnand %p282_p13, %p245_p5 }
 0x141   : > { %p284_p1 = pneg %p283_p0 }
 0x143   : > { %p289_p3 = pnand %p287_p2, %p284_p1 }
 0x145   : > { %292 = shalt.err (!%p289_p3)
}
 0x146   : > { %238 = dma.vmem_to_hbm [thread:$0]  (%p245_p5), %s169_s16, 16, %s424_s1, [#allocation3]   ;;  %v139_v18 = vmul.f32 1.442695, %v138_v8  ;;  %v137_v20 = vld [vmem:[#allocation4] sm:$0x1] }
 0x147   : > { %s339_s28 = smov [#allocation4]  }
 0x148   : > { %265 = vpow2.f32 %v139_v18  ;;  %s179_s29 = sshll.u32 %s339_s28, 4  ;;  %s180_s29 = int_to_ptr.vmem [resolvable:$true] %s179_s29 }
 0x149   : > { %s293_s30 = scalar_lea.vmem %s180_s29, 16  ;;  %s299_s3 = scalar_lea.vmem %s180_s29, 32 }
 0x14a   : > { %p294_p4 = scmp.ne.s32.totalorder %s180_s29, %s293_s30  ;;  %p300_p8 = scmp.lt.s32.totalorder %s180_s29, %s180_s29 }
 0x14b   : > { %p301_p9 = scmp.lt.s32.totalorder %s299_s3, %s293_s30 }
 0x14c   : > { %p295_p6 = pnand %p294_p4, %p245_p5 }
 0x14d   : > { %p302_p10 = por %p301_p9, %p300_p8 }
 0x14e   : > { %p296_p7 = pneg %p295_p6 }
 0x150   : > { %p303_p11 = pnand %p302_p10, %p296_p7 }
 0x152   : > { %v266_v19 = vpop.eup %265 }
 0x153   : > { %v141_v21 = vmul.f32 %v266_v19, %v137_v20 }
 0x1c7   : > { %v156_v22 = vpop.xlane.xlu1 %155 }
 0x1c8   : > { %v157_v23 = vadd.f32 %v156_v22, %v141_v21 }
 0x1ca   : > { %159 = vst.msk [vmem:[#allocation4] sm:$0x1] %vm158_vm2, %v157_v23 }
 0x1cb   : > { %306 = shalt.err (!%p303_p11)
}
 0x1cc   : > { %s307_s6 = scalar_lea.hbm %s425_s2, 16 }
 0x1cd   : > { %p308_p12 = scmp.ne.s32.totalorder %s425_s2, %s307_s6  ;;  %p313_p1 = scmp.lt.u32.totalorder %s307_s6, %s425_s2 }
 0x1cf   : > { %p309_p13 = pnand %p308_p12, %p245_p5 }
 0x1d1   : > { %p310_p0 = pneg %p309_p13 }
 0x1d3   : > { %p315_p2 = pnand %p313_p1, %p310_p0 }
 0x1d5   : > { %318 = shalt.err (!%p315_p2)
}
 0x1d6   : > { %240 = dma.vmem_to_hbm [thread:$0]  (%p245_p5), %s180_s29, 16, %s425_s2, [#allocation5]  }
 0x1d7   : > { %324 = dma.done.wait (%p245_p5), [#allocation3], 16  }
 0x1d8   : > { %326 = vsyncadd (%p245_p5), [#allocation3], 4294967280 }
 0x1d9   : > { %328 = dma.done.wait (%p245_p5), [#allocation5], 16  }
 0x1da   : > { %330 = vsyncadd (%p245_p5), [#allocation5], 4294967280 }
 0x1db PF: > { %s15_s9 = sadd.s32 1, %s333_s9  }
 0x1dc   : > { %p12_p3 = scmp.ge.s32.totalorder %s15_s9, 5  }
 0x1de   :  { %14 = sbr.rel (!%p12_p3) target bundleno = 2 (0x2), region = 63 }
 0x1e5   :  { %196 = vsyncpa [#allocation3], 1 }
 0x1e6   :  { %198 = vsyncpa [#allocation3 + $0x1], 1 }
 0x1e7   :  { %199 = vsyncpa [#allocation5], 1 }

// kernel: attention_gated.5
= control target key start
LH: loop header
LB: loop body
LE: loop exit
PB: predicated region body
PF: predicated region fallthrough
CT: control target
= control target key end

     0   :  { %s502_s0 = inlined_call_operand.vmem [shape: f32[1,384], index: 0, kind: input, shape index: {}]   ;;  %s503_s1 = inlined_call_operand.<no memory space> [shape: f32[1,1], index: 1, kind: input, shape index: {}]   ;;  %s504_s3 = inlined_call_operand.hbm [shape: f32[1,384], index: 3, kind: output, shape index: {}]   ;;  %s505_s2 = inlined_call_operand.<no memory space> [shape: f32[1,1], index: 2, kind: input, shape index: {}]  }
   0x1   :  { %v8_v0 = vstv %s503_s1  ;;  %v10_v1 = vstv %s505_s2 }
   0x2   :  { %9 = vst [vmem:[#allocation2] sm:$0x1] %v8_v0  ;;  %11 = vst [vmem:[#allocation3] sm:$0x1] %v10_v1 }
   0x3   :  { %12 = vsyncpa [#allocation5], 0 }
   0x4   :  { %14 = vsyncpa [#allocation5 + $0x1], 0  ;;  %s402_s16 = smov 0   ;;  %s404_s17 = smov 0  }
   0x5   :  { %s406_s18 = smov 0   ;;  %s408_s19 = smov 0  }
   0x6 LB: > { %s423_s1 = sadd.s32 4294967295, %s372_s19   ;;  %s258_s2 = sadd.s32 4294967294, %s372_s19   ;;  %s372_s19 = sphi %s408_s19, %s511_s19   ;;  %s368_s18 = sphi %s406_s18, %s510_s18   ;;  %s364_s17 = sphi %s404_s17, %s509_s17   ;;  %s360_s16 = sphi %s402_s16, %s508_s16  }
   0x7   : > { %s427_s20 = sadd.s32 1, %s372_s19   ;;  %s95_s21 = sadd.s32 1, %s368_s18 }
   0x8   : > { %s92_s22 = ssub.s32 %s372_s19, %s427_s20  ;;  %p105_p0 = scmp.ne.s32.totalorder %s368_s18, %s364_s17 }
   0x9   : > { %p93_p1 = scmp.eq.s32.totalorder %s92_s22, 0  ;;  %p106_p2 = scmp.eq.s32.totalorder %s423_s1, 2 }
   0xa   : > { %p111_p3 = scmp.ne.s32.totalorder %s364_s17, %s360_s16  ;;  %p112_p4 = scmp.eq.s32.totalorder %s258_s2, 2 }
   0xb   : > { %s438_s23 = scalar_select %p93_p1, %s368_s18, %s95_s21  }
   0xc   : > { %p440_p5 = por %p106_p2, %p105_p0  ;;  %p444_p6 = por %p112_p4, %p111_p3 }
   0xd   : > { %p261_p7 = scmp.ge.s32.totalorder %s372_s19, 1  ;;  %p142_p8 = scmp.lt.s32.totalorder %s372_s19, 4 }
   0xf   : > { %p143_p9 = pnand %p261_p7, %p142_p8 }
  0x10   : > { %v167_v2 = vld [vmem:[#allocation2] sm:$0x1] (!%p143_p9)  ;;  %v374_v3 = vmov (!%p143_p9), 0   ;;  %v180_v4 = vld [vmem:[#allocation3] sm:$0x1] (!%p143_p9)  ;;  %v173_v5 = vlaneseq (!%p143_p9)  ;;  %p163_p10 = scmp.lt.s32.totalorder (!%p143_p9), %s423_s1, 2 }
  0x11   : > { %146 = sbr.rel (%p143_p9) target bundleno = 180 (0xb4), region = 32  ;;  %305 = vset.pattern.permute.xlu0 (!%p143_p9), %v374_v3  ;;  %s161_s30 = sand.u32 (!%p143_p9), 1, %s364_s17  }
  0x12   : > { %170 = vperm.xlu0 (!%p143_p9), %305, %v167_v2   ;;  %v174_v6 = vshrl.u32 (!%p143_p9), %v173_v5, 7  ;;  %s262_s4 = sshll.u32 (!%p143_p9), %s423_s1, 4  ;;  %s162_s5 = scalar_lea.vmem (!%p143_p9), [#allocation4], %s161_s30 }
  0x13   : > { %s206_s6 = sshll.u32 (!%p143_p9), %s162_s5, 4  ;;  %s460_s9 = scalar_lea.hbm (!%p143_p9), %s504_s3, %s262_s4  ;;  %s462_s6 = int_to_ptr.vmem [resolvable:$true] %s206_s6 }
  0x14   : > { %v175_v7 = vsub.s32 (!%p143_p9), 0, %v174_v6  ;;  %s194_s10 = scalar_lea.sflag (!%p143_p9), [#allocation5], %s161_s30  ;;  %s310_s11 = scalar_lea.vmem (!%p143_p9), %s462_s6, 16 }
  0x15   : > { %p311_p11 = scmp.ne.s32.totalorder (!%p143_p9), %s462_s6, %s310_s11  ;;  %s375_s12 = smov (!%p143_p9), [#allocation4]  }
  0x16   : > { %183 = vperm.xlu0 (!%p143_p9), %305, %v180_v4   ;;  %s314_s13 = sshll.u32 (!%p143_p9), %s375_s12, 4  ;;  %s315_s13 = int_to_ptr.vmem [resolvable:$false] %s314_s13 }
  0x17   : > { %p312_p12 = pnand (!%p143_p9), %p311_p11, %p440_p5  ;;  %s316_s14 = scalar_lea.vmem (!%p143_p9), %s315_s13, 32 }
  0x18   : > { %s164_s26 = scalar_select %p163_p10, %s423_s1, 2 }
  0x19   : > { %p313_p13 = pneg %p312_p12  ;;  %p317_p0 = scmp.lt.s32.totalorder %s462_s6, %s315_s13 }
  0x1a   : > { %s165_s29 = scalar_lea.vmem %s502_s0, %s164_s26  ;;  %p318_p1 = scmp.lt.s32.totalorder %s316_s14, %s310_s11 }
  0x1b   : > { %v166_v9 = vld [vmem:[%s165_s29] sm:$0x1] }
  0x1c   : > { %p319_p2 = por %p318_p1, %p317_p0 }
  0x1e   : > { %p320_p3 = pnand %p319_p2, %p313_p13 }
  0x91   : > { %v171_v8 = vpop.permute.xlu0 %170 }
  0x92   : > { %v176_v10 = vrot.slane %v171_v8, %v175_v7 }
  0x94   : > { %v177_v11 = vsub.f32 %v166_v9, %v176_v10 }
  0x95   : > { %v184_v12 = vpop.permute.xlu0 %183 }
  0x96   : > { %v178_v13 = vmul.f32 1.442695, %v177_v11  ;;  %v189_v14 = vrot.slane %v184_v12, %v175_v7 }
  0x98   : > { %306 = vpow2.f32 %v178_v13 }
  0x99   : > { %308 = vrcp.f32 %v189_v14 }
  0xa2   : > { %v307_v15 = vpop.eup %306 }
  0xa3   : > { %v309_v16 = vpop.eup %308 }
  0xa4   : > { %v191_v17 = vmul.f32 %v309_v16, %v307_v15 }
  0xa6   : > { %192 = vst [vmem:[%s162_s5] sm:$0x1] %v191_v17 }
  0xa7   : > { %323 = shalt.err (!%p320_p3)
}
  0xa8   : > { %s324_s15 = scalar_lea.hbm %s460_s9, 16  ;;  %s328_s21 = scalar_lea.hbm %s504_s3, 48 }
  0xa9   : > { %p325_p4 = scmp.ne.s32.totalorder %s460_s9, %s324_s15  ;;  %p329_p9 = scmp.lt.u32.totalorder %s460_s9, %s504_s3 }
  0xaa   : > { %p330_p10 = scmp.lt.u32.totalorder %s328_s21, %s324_s15  ;;  %p332_p12 = scmp.lt.u32.totalorder %s324_s15, %s460_s9 }
  0xab   : > { %p326_p7 = pnand %p325_p4, %p440_p5 }
  0xac   : > { %p331_p11 = por %p330_p10, %p329_p9 }
  0xad   : > { %p327_p8 = pneg %p326_p7 }
  0xae   : > { %p333_p13 = por %p332_p12, %p331_p11 }
  0xb0   : > { %p334_p0 = pnand %p333_p13, %p327_p8 }
  0xb2   : > { %337 = shalt.err (!%p334_p0)
}
  0xb3   : > { %265 = dma.vmem_to_hbm [thread:$0]  (%p440_p5), %s462_s6, 16, %s460_s9, %s194_s10  }
  0xb4 PF: > { %p271_p1 = scmp.ge.s32.totalorder %s372_s19, 2  ;;  %s218_s27 = sand.u32 1, %s360_s16  }
  0xb5   : > { %s219_s28 = scalar_lea.sflag [#allocation5], %s218_s27 }
  0xb6   : > { %p268_p2 = pnand %p271_p1, %p444_p6 }
  0xb8   : > { %355 = dma.done.wait (!%p268_p2), %s219_s28, 16  }
  0xb9   : > { %357 = vsyncadd (!%p268_p2), %s219_s28, 4294967280  ;;  %p17_p3 = scmp.ge.s32.totalorder %s427_s20, 5   ;;  %s508_s16 = smov %s364_s17 }
  0xba   : > { %s509_s17 = smov %s368_s18  ;;  %s510_s18 = smov %s438_s23 }
  0xbb   : > { %s511_s19 = smov %s427_s20  ;;  %19 = sbr.rel (!%p17_p3) target bundleno = 6 (0x6), region = 67 }
  0xc2   :  { %223 = vsyncpa [#allocation5], 1 }
  0xc3   :  { %225 = vsyncpa [#allocation5 + $0x1], 1 }

// kernel: attention_gated.3
= control target key start
LH: loop header
LB: loop body
LE: loop exit
PB: predicated region body
PF: predicated region fallthrough
CT: control target
= control target key end

     0   :  { %s1975_s0 = inlined_call_operand.hbm [shape: f32[300,512], index: 0, kind: input, shape index: {}]   ;;  %s1976_s1 = inlined_call_operand.hbm [shape: f32[512,256], index: 1, kind: input, shape index: {}]   ;;  %s1977_s2 = inlined_call_operand.vmem [shape: f32[1,256], index: 2, kind: input, shape index: {}]   ;;  %s1978_s3 = inlined_call_operand.vmem [shape: f32[1,128], index: 3, kind: input, shape index: {}]   ;;  %s1979_s4 = inlined_call_operand.<no memory space> [shape: f32[1,1], index: 4, kind: input, shape index: {}]   ;;  %s1980_s5 = inlined_call_operand.vmem [shape: f32[1,384], index: 5, kind: output, shape index: {}]  }
   0x1   :  { %v10_v0 = vstv %s1979_s4 }
   0x2   :  { %11 = vst [vmem:[#allocation2] sm:$0x1] %v10_v0 }
   0x3   :  { %12 = vsyncpa [#allocation4], 0 }
   0x4   :  { %14 = vsyncpa [#allocation4 + $0x1], 0 }
   0x5   :  { %15 = vsyncpa [#allocation6], 0  ;;  %s1678_s20 = smov 0   ;;  %s1680_s21 = smov 0  }
   0x6   :  { %s1682_s22 = smov 0   ;;  %s1684_s23 = smov 0  }
   0x7 LB: > { %s1697_s4 = sadd.s32 4294967295, %s1633_s23   ;;  %s1700_s24 = sadd.s32 1, %s1633_s23   ;;  %s1633_s23 = sphi %s1684_s23, %s1996_s23   ;;  %s1629_s22 = sphi %s1682_s22, %s1995_s22   ;;  %s1625_s21 = sphi %s1680_s21, %s1994_s21   ;;  %s1621_s20 = sphi %s1678_s20, %s1993_s20  }
   0x8   : > { %s25_s25 = ssub.s32 %s1633_s23, %s1700_s24  ;;  %s28_s26 = sadd.s32 1, %s1629_s22 }
   0x9   : > { %p26_p0 = scmp.eq.s32.totalorder %s25_s25, 0  ;;  %p35_p1 = scmp.ne.s32.totalorder %s1629_s22, %s1625_s21 }
   0xa   : > { %p36_p2 = scmp.eq.s32.totalorder %s1633_s23, 0  ;;  %p41_p3 = scmp.ne.s32.totalorder %s1625_s21, %s1621_s20 }
   0xb   : > { %s1710_s27 = scalar_select %p26_p0, %s1629_s22, %s28_s26  }
   0xc   : > { %p1712_p4 = por %p36_p2, %p35_p1  ;;  %p1981_p5 = scmp.eq.s32.totalorder %s1697_s4, 0 }
   0xd   : > { %p1085_p6 = scmp.ge.s32.totalorder %s1633_s23, 1  ;;  %p162_p7 = scmp.lt.s32.totalorder %s1633_s23, 4 }
   0xe   : > { %s1984_s28 = scalar_select %p1712_p4, 1, 0 }
   0xf   : > { %p1721_p8 = por %p1981_p5, %p41_p3  ;;  %p1725_p9 = pnand %p1085_p6, %p162_p7 }
  0x10   : > { %s1635_s6 = smov [#allocation5]   ;;  %s1539_s11 = scalar_lea.hbm %s1976_s1, 16384 }
  0x11   : > { %s1985_s29 = scalar_select %p1721_p8, 1, 0 }
  0x12   : > { %s1986_s30 = scalar_select %p1725_p9, 1, 0 }
  0x13   : > { %s174_s7 = sshll.u32 %s1635_s6, 4  ;;  %p1395_p10 = pneg %p1725_p9  ;;  %s175_s7 = int_to_ptr.vmem [resolvable:$true] %s174_s7 }
  0x14   : > { %p1540_p12 = scmp.ne.s32.totalorder %s1976_s1, %s1539_s11  ;;  %p1546_p2 = scmp.lt.u32.totalorder %s1539_s11, %s1976_s1 }
  0x15   : > { %p1733_p11 = pnand %p1395_p10, %p1981_p5 }
  0x17   : > { %p1541_p13 = pneg %p1733_p11 }
  0x19   : > { %p1542_p0 = pnand %p1541_p13, %p1540_p12 }
  0x1b   : > { %p1543_p1 = pneg %p1542_p0 }
  0x1d   : > { %p1548_p3 = pnand %p1546_p2, %p1543_p1 }
  0x1f   : > { %1551 = shalt.err (!%p1548_p3)
}
  0x20   : > { %s1552_s16 = scalar_lea.vmem %s175_s7, 16384  ;;  %p1560_p5 = scmp.lt.s32.totalorder %s175_s7, %s175_s7 }
  0x21   : > { %p1553_p6 = scmp.ne.s32.totalorder %s175_s7, %s1552_s16  ;;  %p1561_p8 = scmp.lt.s32.totalorder %s1552_s16, %s1552_s16 }
  0x23   : > { %p1555_p7 = pnand %p1553_p6, %p1541_p13  ;;  %p1562_p9 = por %p1561_p8, %p1560_p5 }
  0x25   : > { %p1556_p10 = pneg %p1555_p7 }
  0x27   : > { %p1563_p4 = pnand %p1562_p9, %p1556_p10 }
  0x29   : > { %1566 = shalt.err (!%p1563_p4)
}
  0x2a   : > { %s1636_s17 = smov 256   ;;  %s1637_s18 = smov 16  }
  0x2b   : > { %1398 = dma.hbm_to_vmem [thread:$0]  (!%p1733_p11), %s1976_s1, 16384, %s175_s7, [#allocation6], %s1636_s17, %s1636_s17, %s1637_s18  }
  0x2c   : > { %p1087_p12 = scmp.ge.s32.totalorder %s1633_s23, 3 }
  0x2d   : > { %p1988_p0 = scmp.ne.s32.totalorder (!%p1087_p12), %s1984_s28, 0 }
  0x2e   : > { %193 = sbr.rel (%p1087_p12) target bundleno = 88 (0x58), region = 32 }
  0x35   : > { %196 = sbr.rel (!%p1988_p0) target bundleno = 88 (0x58), region = 36  ;;  %s197_s25 = sand.u32 (%p1988_p0), 1, %s1629_s22  }
  0x36   : > { %s1089_s26 = sshll.u32 (%p1988_p0), %s1633_s23, 4  ;;  %s1088_s6 = sshll.u32 (%p1988_p0), %s197_s25, 9 }
  0x37   : > { %s203_s9 = ssub.s32 (%p1988_p0), 38, %s1089_s26  ;;  %s1761_s11 = scalar_lea.sflag (%p1988_p0), [#allocation4], %s197_s25 }
  0x38   : > { %p204_p4 = scmp.lt.s32.totalorder (%p1988_p0), %s203_s9, 16  ;;  %s201_s7 = scalar_lea.vmem (%p1988_p0), [#allocation3], %s1088_s6 }
  0x3c   : > { %s1998_s9 = smov (!%p204_p4, %s203_s9), 16 }
  0x3d   : > { %s1758_s10 = sshll.u32 %s1998_s9, 9 }
  0x3e   : > { %s209_s8 = ssub.s32 8192, %s1758_s10 }
  0x3f   : > { %210 = vsyncadd %s1761_s11, %s209_s8  ;;  %p1092_p5 = scmp.ne.s32.totalorder %s1758_s10, 0  ;;  %s1121_s28 = sshll.u32 %s1633_s23, 13 }
  0x40   : > { %s1769_s14 = scalar_lea.hbm %s1975_s0, %s1121_s28  ;;  %s216_s15 = sshll.u32 %s201_s7, 4  ;;  %s1771_s15 = int_to_ptr.vmem [resolvable:$true] %s216_s15 }
  0x41   : > { %s1567_s16 = scalar_lea.hbm %s1769_s14, %s1758_s10  ;;  %s1571_s23 = scalar_lea.hbm %s1975_s0, 19456 }
  0x42   : > { %p1568_p8 = scmp.ne.s32.totalorder %s1769_s14, %s1567_s16  ;;  %p1572_p13 = scmp.lt.u32.totalorder %s1769_s14, %s1975_s0 }
  0x43   : > { %p1573_p1 = scmp.lt.u32.totalorder %s1571_s23, %s1567_s16  ;;  %p1575_p3 = scmp.lt.u32.totalorder %s1567_s16, %s1769_s14 }
  0x44   : > { %p1569_p9 = pnand %p1568_p8, %p1092_p5 }
  0x45   : > { %p1574_p2 = por %p1573_p1, %p1572_p13 }
  0x46   : > { %p1570_p11 = pneg %p1569_p9 }
  0x47   : > { %p1576_p6 = por %p1575_p3, %p1574_p2 }
  0x49   : > { %p1577_p7 = pnand %p1576_p6, %p1570_p11 }
  0x4b   : > { %1580 = shalt.err (!%p1577_p7)
}
  0x4c   : > { %s1581_s25 = scalar_lea.vmem %s1771_s15, %s1758_s10  ;;  %s1638_s26 = smov [#allocation3]  }
  0x4d   : > { %p1582_p10 = scmp.ne.s32.totalorder %s1771_s15, %s1581_s25  ;;  %s1585_s6 = sshll.u32 %s1638_s26, 4  ;;  %s1586_s6 = int_to_ptr.vmem [resolvable:$false] %s1585_s6 }
  0x4e   : > { %s1587_s9 = scalar_lea.vmem %s1586_s6, 16384  ;;  %p1588_p4 = scmp.lt.s32.totalorder %s1771_s15, %s1586_s6 }
  0x4f   : > { %p1583_p12 = pnand %p1582_p10, %p1092_p5  ;;  %p1589_p8 = scmp.lt.s32.totalorder %s1587_s9, %s1581_s25 }
  0x51   : > { %p1584_p0 = pneg %p1583_p12  ;;  %p1590_p9 = por %p1589_p8, %p1588_p4 }
  0x53   : > { %p1591_p13 = pnand %p1590_p9, %p1584_p0 }
  0x55   : > { %1594 = shalt.err (!%p1591_p13)
}
  0x56   : > { %s1639_s8 = smov 512   ;;  %s1640_s7 = smov 32  }
  0x57   : > { %222 = dma.hbm_to_vmem [thread:$0]  (%p1092_p5), %s1769_s14, %s1758_s10, %s1771_s15, %s1761_s11, %s1639_s8, %s1639_s8, %s1640_s7  }
  0x58 PF: > { %p1989_p11 = scmp.ne.s32.totalorder %s1986_s30, 0 }
  0x59   : > { %s230_s28 = sand.u32 (!%p1989_p11), 1, %s1625_s21   ;;  %p1990_p1 = scmp.ne.s32.totalorder (!%p1989_p11), %s1985_s29, 0 }
  0x5a   : > { %228 = sbr.rel (%p1989_p11) target bundleno = 698 (0x2ba), region = 40  ;;  %s1098_s12 = sshll.u32 (!%p1989_p11), %s230_s28, 9 }
  0x5b   : > { %s231_s13 = scalar_lea.sflag (!%p1989_p11), [#allocation4], %s230_s28  ;;  %s1801_s16 = scalar_lea.vmem (!%p1989_p11), [#allocation3], %s1098_s12 }
  0x61   : > { %1612 = dma.done.wait (%p1990_p1), %s231_s13, 8192  }
  0x62   : > { %1614 = vsyncadd (%p1990_p1), %s231_s13, 4294959104  ;;  %p1991_p2 = scmp.eq.s32.totalorder %s1697_s4, 0 }
  0x64   : > { %1616 = dma.done.wait (%p1991_p2), [#allocation6], 16384   ;;  %p1992_p5 = pmov %p1991_p2 }
  0x65   : > { %v337_v1 = vld [vmem:[#allocation5 + $0x8] sm:$0xff]  ;;  %v339_v2 = vld [vmem:[#allocation5 + $0x18] sm:$0xff]  ;;  %v336_v3 = vld [vmem:[#allocation5] sm:$0xff]  ;;  %vm1642_vm0 = vmmov 0   ;;  %s1116_s14 = sshll.u32 %s1697_s4, 7  ;;  %p269_p3 = scmp.lt.s32.totalorder %s1697_s4, 2 }
  0x66   : > { %1618 = vsyncadd (%p1992_p5), [#allocation6], 4294950912  ;;  %v1174_v4 = vpack.c.bf16 %v339_v2, %v337_v1  ;;  %v338_v5 = vld [vmem:[#allocation5 + $0x10] sm:$0xff]  ;;  %v401_v6 = vld [vmem:[#allocation5 + $0x208] sm:$0xff] }
  0x67   : > { %v403_v7 = vld [vmem:[#allocation5 + $0x218] sm:$0xff]  ;;  %v1176_v8 = vpack.c.bf16 %v338_v5, %v336_v3  ;;  %v400_v10 = vld [vmem:[#allocation5 + $0x200] sm:$0xff]  ;;  %v402_v11 = vld [vmem:[#allocation5 + $0x210] sm:$0xff]  ;;  %s2000_s4 = smov (!%p269_p3, %s1697_s4), 2 }
  0x68   : > { %v1238_v9 = vpack.c.bf16 %v403_v7, %v401_v6  ;;  %v341_v12 = vld [vmem:[#allocation5 + $0x28] sm:$0xff]  ;;  %1175 = vmatprep.subr.bf16.mxu1 %v1174_v4  ;;  %v1240_v13 = vpack.c.bf16 %v402_v11, %v400_v10  ;;  %v343_v14 = vld [vmem:[#allocation5 + $0x38] sm:$0xff]  ;;  %v340_v15 = vld [vmem:[#allocation5 + $0x20] sm:$0xff]  ;;  %s271_s18 = scalar_lea.vmem %s1980_s5, %s2000_s4 }
  0x69   : > { %v342_v16 = vld [vmem:[#allocation5 + $0x30] sm:$0xff]  ;;  %1177 = vmatpush1.bf16.msra.mxu1 %v1176_v8  ;;  %v1178_v17 = vpack.c.bf16 %v343_v14, %v341_v12  ;;  %v405_v19 = vld [vmem:[#allocation5 + $0x228] sm:$0xff]  ;;  %v407_v20 = vld [vmem:[#allocation5 + $0x238] sm:$0xff] }
  0x6a   : > { %1239 = vmatprep.subr.bf16.mxu0 %v1238_v9  ;;  %v1180_v18 = vpack.c.bf16 %v342_v16, %v340_v15  ;;  %v404_v21 = vld [vmem:[#allocation5 + $0x220] sm:$0xff]  ;;  %v1242_v22 = vpack.c.bf16 %v407_v20, %v405_v19  ;;  %v406_v23 = vld [vmem:[#allocation5 + $0x230] sm:$0xff]  ;;  %v345_v24 = vld [vmem:[#allocation5 + $0x48] sm:$0xff] }
  0x6b   : > { %1241 = vmatpush1.bf16.msra.mxu0 %v1240_v13  ;;  %v347_v25 = vld [vmem:[#allocation5 + $0x58] sm:$0xff]  ;;  %1179 = vmatprep.subr.bf16.mxu1 %v1178_v17  ;;  %v1244_v26 = vpack.c.bf16 %v406_v23, %v404_v21  ;;  %v344_v28 = vld [vmem:[#allocation5 + $0x40] sm:$0xff]  ;;  %v346_v29 = vld [vmem:[#allocation5 + $0x50] sm:$0xff] }
  0x6c   : > { %v1182_v27 = vpack.c.bf16 %v347_v25, %v345_v24  ;;  %v409_v30 = vld [vmem:[#allocation5 + $0x248] sm:$0xff]  ;;  %1243 = vmatprep.subr.bf16.mxu0 %v1242_v22  ;;  %v411_v31 = vld [vmem:[#allocation5 + $0x258] sm:$0xff]  ;;  %v408_v32 = vld [vmem:[#allocation5 + $0x240] sm:$0xff]  ;;  %v1184_v34 = vpack.c.bf16 %v346_v29, %v344_v28 }
  0x6d   : > { %v410_v33 = vld [vmem:[#allocation5 + $0x250] sm:$0xff]  ;;  %1181 = vmatpush1.bf16.msra.mxu1 %v1180_v18  ;;  %v1246_v35 = vpack.c.bf16 %v411_v31, %v409_v30  ;;  %v349_v36 = vld [vmem:[#allocation5 + $0x68] sm:$0xff]  ;;  %v351_v37 = vld [vmem:[#allocation5 + $0x78] sm:$0xff] }
  0x6e   : > { %v348_v38 = vld [vmem:[#allocation5 + $0x60] sm:$0xff]  ;;  %1183 = vmatprep.subr.bf16.mxu1 %v1182_v27  ;;  %v1248_v39 = vpack.c.bf16 %v410_v33, %v408_v32  ;;  %v1186_v40 = vpack.c.bf16 %v351_v37, %v349_v36  ;;  %v350_v41 = vld [vmem:[#allocation5 + $0x70] sm:$0xff]  ;;  %v413_v42 = vld [vmem:[#allocation5 + $0x268] sm:$0xff] }
  0x6f   : > { %1245 = vmatpush1.bf16.msra.mxu0 %v1244_v26  ;;  %v415_v43 = vld [vmem:[#allocation5 + $0x278] sm:$0xff]  ;;  %v412_v45 = vld [vmem:[#allocation5 + $0x260] sm:$0xff]  ;;  %v414_v46 = vld [vmem:[#allocation5 + $0x270] sm:$0xff]  ;;  %v1188_v49 = vpack.c.bf16 %v350_v41, %v348_v38 }
  0x70   : > { %1247 = vmatprep.subr.bf16.mxu0 %v1246_v35  ;;  %v1250_v44 = vpack.c.bf16 %v415_v43, %v413_v42  ;;  %v353_v47 = vld [vmem:[#allocation5 + $0x88] sm:$0xff]  ;;  %v355_v48 = vld [vmem:[#allocation5 + $0x98] sm:$0xff]  ;;  %v1252_v52 = vpack.c.bf16 %v414_v46, %v412_v45  ;;  %v352_v54 = vld [vmem:[#allocation5 + $0x80] sm:$0xff] }
  0x71   : > { %1185 = vmatpush1.bf16.msra.mxu1 %v1184_v34  ;;  %v417_v50 = vld [vmem:[#allocation5 + $0x288] sm:$0xff]  ;;  %v419_v51 = vld [vmem:[#allocation5 + $0x298] sm:$0xff]  ;;  %v1190_v53 = vpack.c.bf16 %v355_v48, %v353_v47  ;;  %v354_v55 = vld [vmem:[#allocation5 + $0x90] sm:$0xff] }
  0x72   : > { %1187 = vmatprep.subr.bf16.mxu1 %v1186_v40  ;;  %v416_v56 = vld [vmem:[#allocation5 + $0x280] sm:$0xff]  ;;  %v1254_v57 = vpack.c.bf16 %v419_v51, %v417_v50  ;;  %v418_v58 = vld [vmem:[#allocation5 + $0x290] sm:$0xff]  ;;  %v357_v59 = vld [vmem:[#allocation5 + $0xa8] sm:$0xff]  ;;  %v1192_v63 = vpack.c.bf16 %v354_v55, %v352_v54 }
  0x73   : > { %1249 = vmatpush1.bf16.msra.mxu0 %v1248_v39  ;;  %v359_v60 = vld [vmem:[#allocation5 + $0xb8] sm:$0xff]  ;;  %v421_v61 = vld [vmem:[#allocation5 + $0x2a8] sm:$0xff]  ;;  %v1256_v0 = vpack.c.bf16 %v418_v58, %v416_v56  ;;  %v356_v2 = vld [vmem:[#allocation5 + $0xa0] sm:$0xff] }
  0x74   : > { %1251 = vmatprep.subr.bf16.mxu0 %v1250_v44  ;;  %v423_v62 = vld [vmem:[#allocation5 + $0x2b8] sm:$0xff]  ;;  %v1194_v1 = vpack.c.bf16 %v359_v60, %v357_v59  ;;  %v358_v3 = vld [vmem:[#allocation5 + $0xb0] sm:$0xff]  ;;  %v420_v4 = vld [vmem:[#allocation5 + $0x2a0] sm:$0xff] }
  0x75   : > { %1189 = vmatpush1.bf16.msra.mxu1 %v1188_v49  ;;  %v1258_v5 = vpack.c.bf16 %v423_v62, %v421_v61  ;;  %v422_v6 = vld [vmem:[#allocation5 + $0x2b0] sm:$0xff]  ;;  %v361_v7 = vld [vmem:[#allocation5 + $0xc8] sm:$0xff]  ;;  %v363_v8 = vld [vmem:[#allocation5 + $0xd8] sm:$0xff]  ;;  %v1196_v11 = vpack.c.bf16 %v358_v3, %v356_v2 }
  0x76   : > { %1191 = vmatprep.subr.bf16.mxu1 %v1190_v53  ;;  %v425_v9 = vld [vmem:[#allocation5 + $0x2c8] sm:$0xff]  ;;  %v427_v10 = vld [vmem:[#allocation5 + $0x2d8] sm:$0xff]  ;;  %v1260_v12 = vpack.c.bf16 %v422_v6, %v420_v4  ;;  %v1198_v13 = vpack.c.bf16 %v363_v8, %v361_v7  ;;  %v360_v14 = vld [vmem:[#allocation5 + $0xc0] sm:$0xff] }
  0x77   : > { %1253 = vmatpush1.bf16.msra.mxu0 %v1252_v52  ;;  %v362_v15 = vld [vmem:[#allocation5 + $0xd0] sm:$0xff]  ;;  %v424_v16 = vld [vmem:[#allocation5 + $0x2c0] sm:$0xff]  ;;  %v1262_v17 = vpack.c.bf16 %v427_v10, %v425_v9  ;;  %v365_v19 = vld [vmem:[#allocation5 + $0xe8] sm:$0xff] }
  0x78   : > { %1255 = vmatprep.subr.bf16.mxu0 %v1254_v57  ;;  %v426_v18 = vld [vmem:[#allocation5 + $0x2d0] sm:$0xff]  ;;  %v367_v20 = vld [vmem:[#allocation5 + $0xf8] sm:$0xff]  ;;  %v429_v21 = vld [vmem:[#allocation5 + $0x2e8] sm:$0xff]  ;;  %v1200_v23 = vpack.c.bf16 %v362_v15, %v360_v14 }
  0x79   : > { %1193 = vmatpush1.bf16.msra.mxu1 %v1192_v63  ;;  %v431_v22 = vld [vmem:[#allocation5 + $0x2f8] sm:$0xff]  ;;  %v1264_v24 = vpack.c.bf16 %v426_v18, %v424_v16  ;;  %v1202_v25 = vpack.c.bf16 %v367_v20, %v365_v19  ;;  %v364_v26 = vld [vmem:[#allocation5 + $0xe0] sm:$0xff]  ;;  %v366_v27 = vld [vmem:[#allocation5 + $0xf0] sm:$0xff] }
  0x7a   : > { %1195 = vmatprep.subr.bf16.mxu1 %v1194_v1  ;;  %v428_v28 = vld [vmem:[#allocation5 + $0x2e0] sm:$0xff]  ;;  %v1266_v29 = vpack.c.bf16 %v431_v22, %v429_v21  ;;  %v430_v30 = vld [vmem:[#allocation5 + $0x2f0] sm:$0xff]  ;;  %v369_v31 = vld [vmem:[#allocation5 + $0x108] sm:$0xff]  ;;  %v1204_v35 = vpack.c.bf16 %v366_v27, %v364_v26 }
  0x7b   : > { %1257 = vmatpush1.bf16.msra.mxu0 %v1256_v0  ;;  %v371_v32 = vld [vmem:[#allocation5 + $0x118] sm:$0xff]  ;;  %v433_v33 = vld [vmem:[#allocation5 + $0x308] sm:$0xff]  ;;  %v1268_v36 = vpack.c.bf16 %v430_v30, %v428_v28  ;;  %v368_v38 = vld [vmem:[#allocation5 + $0x100] sm:$0xff] }
  0x7c   : > { %1259 = vmatprep.subr.bf16.mxu0 %v1258_v5  ;;  %v435_v34 = vld [vmem:[#allocation5 + $0x318] sm:$0xff]  ;;  %v1206_v37 = vpack.c.bf16 %v371_v32, %v369_v31  ;;  %v370_v39 = vld [vmem:[#allocation5 + $0x110] sm:$0xff]  ;;  %v432_v40 = vld [vmem:[#allocation5 + $0x300] sm:$0xff] }
  0x7d   : > { %1197 = vmatpush1.bf16.msra.mxu1 %v1196_v11  ;;  %v1270_v41 = vpack.c.bf16 %v435_v34, %v433_v33  ;;  %v434_v42 = vld [vmem:[#allocation5 + $0x310] sm:$0xff]  ;;  %v373_v43 = vld [vmem:[#allocation5 + $0x128] sm:$0xff]  ;;  %v375_v44 = vld [vmem:[#allocation5 + $0x138] sm:$0xff]  ;;  %v1208_v47 = vpack.c.bf16 %v370_v39, %v368_v38 }
  0x7e   : > { %1199 = vmatprep.subr.bf16.mxu1 %v1198_v13  ;;  %v437_v45 = vld [vmem:[#allocation5 + $0x328] sm:$0xff]  ;;  %v439_v46 = vld [vmem:[#allocation5 + $0x338] sm:$0xff]  ;;  %v1272_v48 = vpack.c.bf16 %v434_v42, %v432_v40  ;;  %v1210_v49 = vpack.c.bf16 %v375_v44, %v373_v43  ;;  %v372_v50 = vld [vmem:[#allocation5 + $0x120] sm:$0xff] }
  0x7f   : > { %1261 = vmatpush1.bf16.msra.mxu0 %v1260_v12  ;;  %v374_v51 = vld [vmem:[#allocation5 + $0x130] sm:$0xff]  ;;  %v436_v52 = vld [vmem:[#allocation5 + $0x320] sm:$0xff]  ;;  %v1274_v53 = vpack.c.bf16 %v439_v46, %v437_v45  ;;  %v377_v55 = vld [vmem:[#allocation5 + $0x148] sm:$0xff] }
  0x80   : > { %1263 = vmatprep.subr.bf16.mxu0 %v1262_v17  ;;  %v438_v54 = vld [vmem:[#allocation5 + $0x330] sm:$0xff]  ;;  %v379_v56 = vld [vmem:[#allocation5 + $0x158] sm:$0xff]  ;;  %v441_v57 = vld [vmem:[#allocation5 + $0x348] sm:$0xff]  ;;  %v1212_v59 = vpack.c.bf16 %v374_v51, %v372_v50 }
  0x81   : > { %1201 = vmatpush1.bf16.msra.mxu1 %v1200_v23  ;;  %v443_v58 = vld [vmem:[#allocation5 + $0x358] sm:$0xff]  ;;  %v1276_v60 = vpack.c.bf16 %v438_v54, %v436_v52  ;;  %v1214_v61 = vpack.c.bf16 %v379_v56, %v377_v55  ;;  %v376_v62 = vld [vmem:[#allocation5 + $0x140] sm:$0xff]  ;;  %v378_v63 = vld [vmem:[#allocation5 + $0x150] sm:$0xff] }
  0x82   : > { %1203 = vmatprep.subr.bf16.mxu1 %v1202_v25  ;;  %v440_v0 = vld [vmem:[#allocation5 + $0x340] sm:$0xff]  ;;  %v1278_v1 = vpack.c.bf16 %v443_v58, %v441_v57  ;;  %v442_v2 = vld [vmem:[#allocation5 + $0x350] sm:$0xff]  ;;  %v381_v3 = vld [vmem:[#allocation5 + $0x168] sm:$0xff]  ;;  %v1216_v7 = vpack.c.bf16 %v378_v63, %v376_v62 }
  0x83   : > { %1265 = vmatpush1.bf16.msra.mxu0 %v1264_v24  ;;  %v383_v4 = vld [vmem:[#allocation5 + $0x178] sm:$0xff]  ;;  %v445_v5 = vld [vmem:[#allocation5 + $0x368] sm:$0xff]  ;;  %v380_v8 = vld [vmem:[#allocation5 + $0x160] sm:$0xff]  ;;  %v1280_v9 = vpack.c.bf16 %v442_v2, %v440_v0 }
  0x84   : > { %1267 = vmatprep.subr.bf16.mxu0 %v1266_v29  ;;  %v447_v6 = vld [vmem:[#allocation5 + $0x378] sm:$0xff]  ;;  %v1218_v10 = vpack.c.bf16 %v383_v4, %v381_v3  ;;  %v382_v11 = vld [vmem:[#allocation5 + $0x170] sm:$0xff]  ;;  %v444_v12 = vld [vmem:[#allocation5 + $0x360] sm:$0xff] }
  0x85   : > { %1205 = vmatpush1.bf16.msra.mxu1 %v1204_v35  ;;  %v446_v13 = vld [vmem:[#allocation5 + $0x370] sm:$0xff]  ;;  %v1282_v14 = vpack.c.bf16 %v447_v6, %v445_v5  ;;  %v385_v15 = vld [vmem:[#allocation5 + $0x188] sm:$0xff]  ;;  %v387_v16 = vld [vmem:[#allocation5 + $0x198] sm:$0xff]  ;;  %v1220_v21 = vpack.c.bf16 %v382_v11, %v380_v8 }
  0x86   : > { %1207 = vmatprep.subr.bf16.mxu1 %v1206_v37  ;;  %v273_v17 = vld [vmem:[%s1801_s16 + $0x8] sm:$0xff]  ;;  %v451_v19 = vld [vmem:[#allocation5 + $0x398] sm:$0xff]  ;;  %v1284_v22 = vpack.c.bf16 %v446_v13, %v444_v12  ;;  %v1222_v23 = vpack.c.bf16 %v387_v16, %v385_v15  ;;  %v384_v24 = vld [vmem:[#allocation5 + $0x180] sm:$0xff] }
  0x87   : > { %1269 = vmatpush1.bf16.msra.mxu0 %v1268_v36  ;;  %v449_v18 = vld [vmem:[#allocation5 + $0x388] sm:$0xff]  ;;  %540 = vmatprep.mubr.f32.mxu1 %v273_v17  ;;  %v275_v20 = vld [vmem:[%s1801_s16 + $0x18] sm:$0xff]  ;;  %v386_v25 = vld [vmem:[#allocation5 + $0x190] sm:$0xff] }
  0x88   : > { %1271 = vmatprep.subr.bf16.mxu0 %v1270_v41  ;;  %701 = vmatprep.mubr.f32.mxu0 %v275_v20  ;;  %v448_v26 = vld [vmem:[#allocation5 + $0x380] sm:$0xff]  ;;  %v1286_v27 = vpack.c.bf16 %v451_v19, %v449_v18  ;;  %v450_v28 = vld [vmem:[#allocation5 + $0x390] sm:$0xff]  ;;  %v389_v29 = vld [vmem:[#allocation5 + $0x1a8] sm:$0xff]  ;;  %v1224_v33 = vpack.c.bf16 %v386_v25, %v384_v24 }
  0x89   : > { %1209 = vmatpush1.bf16.msra.mxu1 %v1208_v47  ;;  %v391_v30 = vld [vmem:[#allocation5 + $0x1b8] sm:$0xff]  ;;  %v453_v31 = vld [vmem:[#allocation5 + $0x3a8] sm:$0xff]  ;;  %v1288_v34 = vpack.c.bf16 %v450_v28, %v448_v26  ;;  %v388_v36 = vld [vmem:[#allocation5 + $0x1a0] sm:$0xff] }
  0x8a   : > { %1211 = vmatprep.subr.bf16.mxu1 %v1210_v49  ;;  %v455_v32 = vld [vmem:[#allocation5 + $0x3b8] sm:$0xff]  ;;  %v1226_v35 = vpack.c.bf16 %v391_v30, %v389_v29  ;;  %v390_v37 = vld [vmem:[#allocation5 + $0x1b0] sm:$0xff]  ;;  %v452_v38 = vld [vmem:[#allocation5 + $0x3a0] sm:$0xff] }
  0x8b   : > { %1273 = vmatpush1.bf16.msra.mxu0 %v1272_v48  ;;  %v1290_v39 = vpack.c.bf16 %v455_v32, %v453_v31  ;;  %v454_v40 = vld [vmem:[#allocation5 + $0x3b0] sm:$0xff]  ;;  %v393_v41 = vld [vmem:[#allocation5 + $0x1c8] sm:$0xff]  ;;  %v395_v42 = vld [vmem:[#allocation5 + $0x1d8] sm:$0xff]  ;;  %v1228_v45 = vpack.c.bf16 %v390_v37, %v388_v36 }
  0x8c   : > { %1275 = vmatprep.subr.bf16.mxu0 %v1274_v53  ;;  %v457_v43 = vld [vmem:[#allocation5 + $0x3c8] sm:$0xff]  ;;  %v459_v44 = vld [vmem:[#allocation5 + $0x3d8] sm:$0xff]  ;;  %v1292_v46 = vpack.c.bf16 %v454_v40, %v452_v38  ;;  %v1230_v47 = vpack.c.bf16 %v395_v42, %v393_v41  ;;  %v392_v48 = vld [vmem:[#allocation5 + $0x1c0] sm:$0xff] }
  0x8d   : > { %1213 = vmatpush1.bf16.msra.mxu1 %v1212_v59  ;;  %v394_v49 = vld [vmem:[#allocation5 + $0x1d0] sm:$0xff]  ;;  %v456_v50 = vld [vmem:[#allocation5 + $0x3c0] sm:$0xff]  ;;  %v1294_v51 = vpack.c.bf16 %v459_v44, %v457_v43  ;;  %v397_v53 = vld [vmem:[#allocation5 + $0x1e8] sm:$0xff] }
  0x8e   : > { %1215 = vmatprep.subr.bf16.mxu1 %v1214_v61  ;;  %v458_v52 = vld [vmem:[#allocation5 + $0x3d0] sm:$0xff]  ;;  %v399_v54 = vld [vmem:[#allocation5 + $0x1f8] sm:$0xff]  ;;  %v461_v55 = vld [vmem:[#allocation5 + $0x3e8] sm:$0xff]  ;;  %v1232_v57 = vpack.c.bf16 %v394_v49, %v392_v48 }
  0x8f   : > { %1277 = vmatpush1.bf16.msra.mxu0 %v1276_v60  ;;  %v463_v56 = vld [vmem:[#allocation5 + $0x3f8] sm:$0xff]  ;;  %v1296_v58 = vpack.c.bf16 %v458_v52, %v456_v50  ;;  %v1234_v59 = vpack.c.bf16 %v399_v54, %v397_v53  ;;  %v396_v60 = vld [vmem:[#allocation5 + $0x1e0] sm:$0xff]  ;;  %v398_v61 = vld [vmem:[#allocation5 + $0x1f0] sm:$0xff] }
  0x90   : > { %1279 = vmatprep.subr.bf16.mxu0 %v1278_v1  ;;  %v1298_v62 = vpack.c.bf16 %v463_v56, %v461_v55  ;;  %v460_v63 = vld [vmem:[#allocation5 + $0x3e0] sm:$0xff]  ;;  %v462_v0 = vld [vmem:[#allocation5 + $0x3f0] sm:$0xff]  ;;  %v1236_v1 = vpack.c.bf16 %v398_v61, %v396_v60  ;;  %v277_v5 = vld [vmem:[%s1801_s16 + $0x28] sm:$0xff] }
  0x91   : > { %1217 = vmatpush1.bf16.msra.mxu1 %v1216_v7  ;;  %v1300_v2 = vpack.c.bf16 %v462_v0, %v460_v63  ;;  %v272_v3 = vld [vmem:[%s1801_s16] sm:$0xff]  ;;  %v274_v4 = vld [vmem:[%s1801_s16 + $0x10] sm:$0xff]  ;;  %v279_v6 = vld [vmem:[%s1801_s16 + $0x38] sm:$0xff] }
  0x92   : > { %1219 = vmatprep.subr.bf16.mxu1 %v1218_v10  ;;  %v276_v7 = vld [vmem:[%s1801_s16 + $0x20] sm:$0xff]  ;;  %v278_v8 = vld [vmem:[%s1801_s16 + $0x30] sm:$0xff]  ;;  %v283_v10 = vld [vmem:[%s1801_s16 + $0x58] sm:$0xff] }
  0x93   : > { %1281 = vmatpush1.bf16.msra.mxu0 %v1280_v9  ;;  %v281_v9 = vld [vmem:[%s1801_s16 + $0x48] sm:$0xff]  ;;  %v280_v11 = vld [vmem:[%s1801_s16 + $0x40] sm:$0xff]  ;;  %v282_v12 = vld [vmem:[%s1801_s16 + $0x50] sm:$0xff] }
  0x94   : > { %1283 = vmatprep.subr.bf16.mxu0 %v1282_v14  ;;  %v285_v13 = vld [vmem:[%s1801_s16 + $0x68] sm:$0xff]  ;;  %v287_v14 = vld [vmem:[%s1801_s16 + $0x78] sm:$0xff]  ;;  %v284_v15 = vld [vmem:[%s1801_s16 + $0x60] sm:$0xff] }
  0x95   : > { %1221 = vmatpush1.bf16.msra.mxu1 %v1220_v21  ;;  %v286_v16 = vld [vmem:[%s1801_s16 + $0x70] sm:$0xff]  ;;  %v289_v17 = vld [vmem:[%s1801_s16 + $0x88] sm:$0xff]  ;;  %v291_v18 = vld [vmem:[%s1801_s16 + $0x98] sm:$0xff] }
  0x96   : > { %1223 = vmatprep.subr.bf16.mxu1 %v1222_v23  ;;  %v288_v19 = vld [vmem:[%s1801_s16 + $0x80] sm:$0xff]  ;;  %v290_v20 = vld [vmem:[%s1801_s16 + $0x90] sm:$0xff]  ;;  %v293_v21 = vld [vmem:[%s1801_s16 + $0xa8] sm:$0xff] }
  0x97   : > { %1285 = vmatpush1.bf16.msra.mxu0 %v1284_v22  ;;  %v295_v22 = vld [vmem:[%s1801_s16 + $0xb8] sm:$0xff]  ;;  %v292_v23 = vld [vmem:[%s1801_s16 + $0xa0] sm:$0xff]  ;;  %v294_v24 = vld [vmem:[%s1801_s16 + $0xb0] sm:$0xff] }
  0x98   : > { %1287 = vmatprep.subr.bf16.mxu0 %v1286_v27  ;;  %v297_v25 = vld [vmem:[%s1801_s16 + $0xc8] sm:$0xff]  ;;  %v299_v26 = vld [vmem:[%s1801_s16 + $0xd8] sm:$0xff]  ;;  %v296_v27 = vld [vmem:[%s1801_s16 + $0xc0] sm:$0xff] }
  0x99   : > { %1225 = vmatpush1.bf16.msra.mxu1 %v1224_v33  ;;  %v298_v28 = vld [vmem:[%s1801_s16 + $0xd0] sm:$0xff]  ;;  %v301_v29 = vld [vmem:[%s1801_s16 + $0xe8] sm:$0xff]  ;;  %v303_v30 = vld [vmem:[%s1801_s16 + $0xf8] sm:$0xff] }
  0x9a   : > { %1227 = vmatprep.subr.bf16.mxu1 %v1226_v35  ;;  %v300_v31 = vld [vmem:[%s1801_s16 + $0xe0] sm:$0xff]  ;;  %v302_v32 = vld [vmem:[%s1801_s16 + $0xf0] sm:$0xff]  ;;  %v305_v33 = vld [vmem:[%s1801_s16 + $0x108] sm:$0xff] }
  0x9b   : > { %1289 = vmatpush1.bf16.msra.mxu0 %v1288_v34  ;;  %v307_v34 = vld [vmem:[%s1801_s16 + $0x118] sm:$0xff]  ;;  %v304_v35 = vld [vmem:[%s1801_s16 + $0x100] sm:$0xff]  ;;  %v306_v36 = vld [vmem:[%s1801_s16 + $0x110] sm:$0xff] }
  0x9c   : > { %1291 = vmatprep.subr.bf16.mxu0 %v1290_v39  ;;  %v309_v37 = vld [vmem:[%s1801_s16 + $0x128] sm:$0xff]  ;;  %v311_v38 = vld [vmem:[%s1801_s16 + $0x138] sm:$0xff]  ;;  %v308_v39 = vld [vmem:[%s1801_s16 + $0x120] sm:$0xff] }
  0x9d   : > { %1229 = vmatpush1.bf16.msra.mxu1 %v1228_v45  ;;  %v310_v40 = vld [vmem:[%s1801_s16 + $0x130] sm:$0xff]  ;;  %v313_v41 = vld [vmem:[%s1801_s16 + $0x148] sm:$0xff]  ;;  %v315_v42 = vld [vmem:[%s1801_s16 + $0x158] sm:$0xff] }
  0x9e   : > { %1231 = vmatprep.subr.bf16.mxu1 %v1230_v47  ;;  %v312_v43 = vld [vmem:[%s1801_s16 + $0x140] sm:$0xff]  ;;  %v314_v44 = vld [vmem:[%s1801_s16 + $0x150] sm:$0xff]  ;;  %v317_v45 = vld [vmem:[%s1801_s16 + $0x168] sm:$0xff] }
  0x9f   : > { %1293 = vmatpush1.bf16.msra.mxu0 %v1292_v46  ;;  %v319_v46 = vld [vmem:[%s1801_s16 + $0x178] sm:$0xff]  ;;  %v316_v47 = vld [vmem:[%s1801_s16 + $0x160] sm:$0xff]  ;;  %v318_v48 = vld [vmem:[%s1801_s16 + $0x170] sm:$0xff] }
  0xa0   : > { %1295 = vmatprep.subr.bf16.mxu0 %v1294_v51  ;;  %v321_v49 = vld [vmem:[%s1801_s16 + $0x188] sm:$0xff]  ;;  %v323_v50 = vld [vmem:[%s1801_s16 + $0x198] sm:$0xff]  ;;  %v320_v51 = vld [vmem:[%s1801_s16 + $0x180] sm:$0xff] }
  0xa1   : > { %1233 = vmatpush1.bf16.msra.mxu1 %v1232_v57  ;;  %v322_v52 = vld [vmem:[%s1801_s16 + $0x190] sm:$0xff]  ;;  %v325_v53 = vld [vmem:[%s1801_s16 + $0x1a8] sm:$0xff]  ;;  %v327_v54 = vld [vmem:[%s1801_s16 + $0x1b8] sm:$0xff] }
  0xa2   : > { %1235 = vmatprep.subr.bf16.mxu1 %v1234_v59  ;;  %v324_v55 = vld [vmem:[%s1801_s16 + $0x1a0] sm:$0xff]  ;;  %v326_v56 = vld [vmem:[%s1801_s16 + $0x1b0] sm:$0xff]  ;;  %v329_v57 = vld [vmem:[%s1801_s16 + $0x1c8] sm:$0xff] }
  0xa3   : > { %1297 = vmatpush1.bf16.msra.mxu0 %v1296_v58  ;;  %v331_v58 = vld [vmem:[%s1801_s16 + $0x1d8] sm:$0xff]  ;;  %v328_v59 = vld [vmem:[%s1801_s16 + $0x1c0] sm:$0xff]  ;;  %v330_v60 = vld [vmem:[%s1801_s16 + $0x1d0] sm:$0xff] }
  0xa4   : > { %1299 = vmatprep.subr.bf16.mxu0 %v1298_v62  ;;  %v333_v61 = vld [vmem:[%s1801_s16 + $0x1e8] sm:$0xff]  ;;  %v335_v62 = vld [vmem:[%s1801_s16 + $0x1f8] sm:$0xff]  ;;  %v332_v63 = vld [vmem:[%s1801_s16 + $0x1e0] sm:$0xff] }
  0xa5   : > { %1237 = vmatpush1.bf16.msra.mxu1 %v1236_v1  ;;  %v334_v0 = vld [vmem:[%s1801_s16 + $0x1f0] sm:$0xff]  ;;  %v1641_v1 = vmov 0.0|0.0  }
  0xa6   : > { %1302 = vmatprep.subr.bf16.mxu1 %v1641_v1 }
  0xa7   : > { %1301 = vmatpush1.bf16.msra.mxu0 %v1300_v2  ;;  %v1643_v2 = vmov 0.0  }
  0xa8   : > { %541 = vmatmul.mubr.f32.vlgmr.msra.gmra.mrb[0].mxu1 %v272_v3  ;;  %v927_v3 = vld [vmem:[#allocation2] sm:$0x1] }
  0xa9   : > { %546 = vmatprep.mubr.f32.mxu1 %v277_v5  ;;  %v466_v5 = vlaneseq }
  0xaa   : > { %702 = vmatmul.mubr.f32.vlgmr.msra.gmra.mrb[0].mxu0 %v274_v4  ;;  %v1644_v4 = vmov 0  }
  0xab   : > { %707 = vmatprep.mubr.f32.mxu0 %v279_v6  ;;  %1442 = vset.pattern.permute.xlu0 %v1644_v4  ;;  %v1877_v6 = vshrl.u32 %v466_v5, 7 }
  0xac   : > { %547 = vmatmul.mubr.f32.gmra.mrb[2].mxu1 %v276_v7  ;;  %930 = vperm.xlu0 %1442, %v927_v3  }
  0xad   : > { %552 = vmatprep.mubr.f32.mxu1 %v281_v9  ;;  %v468_v7 = vsub.s32 0, %v1877_v6  ;;  %v472_v9 = vsub.s32 1, %v1877_v6 }
  0xae   : > { %708 = vmatmul.mubr.f32.gmra.mrb[2].mxu0 %v278_v8  ;;  %v464_v8 = vld [vmem:[%s1977_s2] sm:$0x3] }
  0xaf   : > { %713 = vmatprep.mubr.f32.mxu0 %v283_v10  ;;  %v1886_v10 = vrot.slane %v464_v8, %v468_v7 }
  0xb0   : > { %553 = vmatmul.mubr.f32.gmra.mrb[4].mxu1 %v280_v11  ;;  %v1888_v11 = vrot.slane %v464_v8, %v472_v9 }
  0xb1   : > { %558 = vmatprep.mubr.f32.mxu1 %v285_v13 }
  0xb2   : > { %714 = vmatmul.mubr.f32.gmra.mrb[4].mxu0 %v282_v12 }
  0xb3   : > { %719 = vmatprep.mubr.f32.mxu0 %v287_v14 }
  0xb4   : > { %559 = vmatmul.mubr.f32.gmra.mrb[6].mxu1 %v284_v15 }
  0xb5   : > { %564 = vmatprep.mubr.f32.mxu1 %v289_v17 }
  0xb6   : > { %720 = vmatmul.mubr.f32.gmra.mrb[6].mxu0 %v286_v16 }
  0xb7   : > { %725 = vmatprep.mubr.f32.mxu0 %v291_v18 }
  0xb8   : > { %565 = vmatmul.mubr.f32.gmra.mrb[8].mxu1 %v288_v19 }
  0xb9   : > { %570 = vmatprep.mubr.f32.mxu1 %v293_v21 }
  0xba   : > { %726 = vmatmul.mubr.f32.gmra.mrb[8].mxu0 %v290_v20 }
  0xbb   : > { %731 = vmatprep.mubr.f32.mxu0 %v295_v22 }
  0xbc   : > { %571 = vmatmul.mubr.f32.gmra.mrb[10].mxu1 %v292_v23 }
  0xbd   : > { %576 = vmatprep.mubr.f32.mxu1 %v297_v25 }
  0xbe   : > { %732 = vmatmul.mubr.f32.gmra.mrb[10].mxu0 %v294_v24 }
  0xbf   : > { %737 = vmatprep.mubr.f32.mxu0 %v299_v26 }
  0xc0   : > { %577 = vmatmul.mubr.f32.gmra.mrb[12].mxu1 %v296_v27 }
  0xc1   : > { %582 = vmatprep.mubr.f32.mxu1 %v301_v29 }
  0xc2   : > { %738 = vmatmul.mubr.f32.gmra.mrb[12].mxu0 %v298_v28 }
  0xc3   : > { %743 = vmatprep.mubr.f32.mxu0 %v303_v30 }
  0xc4   : > { %583 = vmatmul.mubr.f32.gmra.mrb[14].mxu1 %v300_v31 }
  0xc5   : > { %588 = vmatprep.mubr.f32.mxu1 %v305_v33 }
  0xc6   : > { %744 = vmatmul.mubr.f32.gmra.mrb[14].mxu0 %v302_v32 }
  0xc7   : > { %749 = vmatprep.mubr.f32.mxu0 %v307_v34 }
  0xc8   : > { %589 = vmatmul.mubr.f32.gmra.mrb[16].mxu1 %v304_v35 }
  0xc9   : > { %594 = vmatprep.mubr.f32.mxu1 %v309_v37 }
  0xca   : > { %750 = vmatmul.mubr.f32.gmra.mrb[16].mxu0 %v306_v36 }
  0xcb   : > { %755 = vmatprep.mubr.f32.mxu0 %v311_v38 }
  0xcc   : > { %595 = vmatmul.mubr.f32.gmra.mrb[18].mxu1 %v308_v39 }
  0xcd   : > { %600 = vmatprep.mubr.f32.mxu1 %v313_v41 }
  0xce   : > { %756 = vmatmul.mubr.f32.gmra.mrb[18].mxu0 %v310_v40 }
  0xcf   : > { %761 = vmatprep.mubr.f32.mxu0 %v315_v42 }
  0xd0   : > { %601 = vmatmul.mubr.f32.gmra.mrb[20].mxu1 %v312_v43 }
  0xd1   : > { %606 = vmatprep.mubr.f32.mxu1 %v317_v45 }
  0xd2   : > { %762 = vmatmul.mubr.f32.gmra.mrb[20].mxu0 %v314_v44 }
  0xd3   : > { %767 = vmatprep.mubr.f32.mxu0 %v319_v46 }
  0xd4   : > { %607 = vmatmul.mubr.f32.gmra.mrb[22].mxu1 %v316_v47 }
  0xd5   : > { %612 = vmatprep.mubr.f32.mxu1 %v321_v49 }
  0xd6   : > { %768 = vmatmul.mubr.f32.gmra.mrb[22].mxu0 %v318_v48 }
  0xd7   : > { %773 = vmatprep.mubr.f32.mxu0 %v323_v50 }
  0xd8   : > { %613 = vmatmul.mubr.f32.gmra.mrb[24].mxu1 %v320_v51 }
  0xd9   : > { %618 = vmatprep.mubr.f32.mxu1 %v325_v53 }
  0xda   : > { %774 = vmatmul.mubr.f32.gmra.mrb[24].mxu0 %v322_v52 }
  0xdb   : > { %779 = vmatprep.mubr.f32.mxu0 %v327_v54 }
  0xdc   : > { %619 = vmatmul.mubr.f32.gmra.mrb[26].mxu1 %v324_v55 }
  0xdd   : > { %624 = vmatprep.mubr.f32.mxu1 %v329_v57 }
  0xde   : > { %780 = vmatmul.mubr.f32.gmra.mrb[26].mxu0 %v326_v56 }
  0xdf   : > { %785 = vmatprep.mubr.f32.mxu0 %v331_v58 }
  0xe0   : > { %625 = vmatmul.mubr.f32.gmra.mrb[28].mxu1 %v328_v59 }
  0xe1   : > { %630 = vmatprep.mubr.f32.mxu1 %v333_v61 }
  0xe2   : > { %786 = vmatmul.mubr.f32.gmra.mrb[28].mxu0 %v330_v60 }
  0xe3   : > { %791 = vmatprep.mubr.f32.mxu0 %v335_v62 }
  0xe4   : > { %631 = vmatmul.mubr.f32.gmra.mrb[30].mxu1 %v332_v63 }
  0xe5   : > { %1171 = vmatprep.mubr.msk.f32.mxu1 %vm1642_vm0, %v1643_v2 }
  0xe6   : > { %792 = vmatmul.mubr.f32.gmra.mrb[30].mxu0 %v334_v0 }
 0x17b   : > { %v542_v12 = vpop.f32.mrb[0].mxu1 }
 0x17c   : > { %v543_v13 = vadd.f32 %v542_v12, %v1886_v10  ;;  %v544_v14 = vpop.f32.mrb[1].mxu1 }
 0x17d   : > { %v703_v15 = vpop.f32.mrb[0].mxu0  ;;  %v545_v16 = vadd.f32 %v544_v14, %v1888_v11 }
 0x17e   : > { %v705_v17 = vpop.f32.mrb[1].mxu0  ;;  %v704_v18 = vadd.f32 %v703_v15, %v543_v13 }
 0x17f   : > { %v706_v19 = vadd.f32 %v705_v17, %v545_v16  ;;  %v548_v20 = vpop.f32.mrb[2].mxu1 }
 0x180   : > { %v549_v21 = vadd.f32 %v548_v20, %v1886_v10  ;;  %v550_v22 = vpop.f32.mrb[3].mxu1 }
 0x181   : > { %v709_v23 = vpop.f32.mrb[2].mxu0  ;;  %v1100_v24 = vmul.f32 -1.442695, %v706_v19  ;;  %v551_v25 = vadd.f32 %v550_v22, %v1888_v11 }
 0x182   : > { %v711_v26 = vpop.f32.mrb[3].mxu0  ;;  %v710_v27 = vadd.f32 %v709_v23, %v549_v21 }
 0x183   : > { %1443 = vpow2.f32 %v1100_v24  ;;  %v712_v28 = vadd.f32 %v711_v26, %v551_v25  ;;  %v554_v29 = vpop.f32.mrb[4].mxu1 }
 0x184   : > { %v555_v30 = vadd.f32 %v554_v29, %v1886_v10  ;;  %v556_v31 = vpop.f32.mrb[5].mxu1 }
 0x185   : > { %v715_v32 = vpop.f32.mrb[4].mxu0  ;;  %v1101_v33 = vmul.f32 -1.442695, %v712_v28  ;;  %v557_v34 = vadd.f32 %v556_v31, %v1888_v11 }
 0x186   : > { %v717_v35 = vpop.f32.mrb[5].mxu0  ;;  %v716_v36 = vadd.f32 %v715_v32, %v555_v30 }
 0x187   : > { %1445 = vpow2.f32 %v1101_v33  ;;  %v718_v37 = vadd.f32 %v717_v35, %v557_v34  ;;  %v560_v38 = vpop.f32.mrb[6].mxu1 }
 0x188   : > { %v561_v39 = vadd.f32 %v560_v38, %v1886_v10  ;;  %v562_v40 = vpop.f32.mrb[7].mxu1 }
 0x189   : > { %v721_v41 = vpop.f32.mrb[6].mxu0  ;;  %v1102_v42 = vmul.f32 -1.442695, %v718_v37  ;;  %v563_v43 = vadd.f32 %v562_v40, %v1888_v11 }
 0x18a   : > { %v723_v44 = vpop.f32.mrb[7].mxu0  ;;  %v722_v45 = vadd.f32 %v721_v41, %v561_v39 }
 0x18b   : > { %1447 = vpow2.f32 %v1102_v42  ;;  %v724_v46 = vadd.f32 %v723_v44, %v563_v43  ;;  %v566_v47 = vpop.f32.mrb[8].mxu1 }
 0x18c   : > { %v567_v48 = vadd.f32 %v566_v47, %v1886_v10  ;;  %v568_v49 = vpop.f32.mrb[9].mxu1  ;;  %1449 = vtanh.f32 %v704_v18 }
 0x18d   : > { %v727_v50 = vpop.f32.mrb[8].mxu0  ;;  %v1444_v51 = vpop.eup %1443  ;;  %v1103_v52 = vmul.f32 -1.442695, %v724_v46  ;;  %v569_v53 = vadd.f32 %v568_v49, %v1888_v11 }
 0x18e   : > { %v729_v54 = vpop.f32.mrb[9].mxu0  ;;  %v862_v55 = vadd.f32 1.0, %v1444_v51  ;;  %v728_v56 = vadd.f32 %v727_v50, %v567_v48 }
 0x18f   : > { %1451 = vpow2.f32 %v1103_v52  ;;  %v730_v57 = vadd.f32 %v729_v54, %v569_v53  ;;  %v572_v58 = vpop.f32.mrb[10].mxu1 }
 0x190   : > { %1453 = vrcp.f32 %v862_v55  ;;  %v573_v59 = vadd.f32 %v572_v58, %v1886_v10  ;;  %v574_v60 = vpop.f32.mrb[11].mxu1 }
 0x191   : > { %v733_v61 = vpop.f32.mrb[10].mxu0  ;;  %v1446_v62 = vpop.eup %1445  ;;  %v1104_v63 = vmul.f32 -1.442695, %v730_v57  ;;  %v575_v0 = vadd.f32 %v574_v60, %v1888_v11  ;;  %1455 = vtanh.f32 %v710_v27 }
 0x192   : > { %v735_v2 = vpop.f32.mrb[11].mxu0  ;;  %v863_v3 = vadd.f32 1.0, %v1446_v62  ;;  %v734_v4 = vadd.f32 %v733_v61, %v573_v59 }
 0x193   : > { %1457 = vpow2.f32 %v1104_v63  ;;  %v736_v8 = vadd.f32 %v735_v2, %v575_v0  ;;  %v578_v9 = vpop.f32.mrb[12].mxu1 }
 0x194   : > { %1459 = vrcp.f32 %v863_v3  ;;  %v579_v12 = vadd.f32 %v578_v9, %v1886_v10  ;;  %v580_v13 = vpop.f32.mrb[13].mxu1 }
 0x195   : > { %v739_v14 = vpop.f32.mrb[12].mxu0  ;;  %v1448_v15 = vpop.eup %1447  ;;  %v1105_v16 = vmul.f32 -1.442695, %v736_v8  ;;  %v581_v17 = vadd.f32 %v580_v13, %v1888_v11  ;;  %1461 = vtanh.f32 %v716_v36 }
 0x196   : > { %v741_v18 = vpop.f32.mrb[13].mxu0  ;;  %v864_v19 = vadd.f32 1.0, %v1448_v15  ;;  %v1904_v20 = vadd.f32 %v739_v14, %v579_v12  ;;  %v1450_v23 = vpop.eup %1449 }
 0x197   : > { %1463 = vpow2.f32 %v1105_v16  ;;  %v742_v21 = vadd.f32 %v741_v18, %v581_v17  ;;  %v584_v22 = vpop.f32.mrb[14].mxu1 }
 0x198   : > { %1465 = vrcp.f32 %v864_v19  ;;  %v585_v24 = vadd.f32 %v584_v22, %v1886_v10  ;;  %v586_v25 = vpop.f32.mrb[15].mxu1 }
 0x199   : > { %v745_v26 = vpop.f32.mrb[14].mxu0  ;;  %v1452_v27 = vpop.eup %1451  ;;  %v1106_v28 = vmul.f32 -1.442695, %v742_v21  ;;  %v587_v29 = vadd.f32 %v586_v25, %v1888_v11  ;;  %1467 = vtanh.f32 %v722_v45 }
 0x19a   : > { %v747_v30 = vpop.f32.mrb[15].mxu0  ;;  %v1454_v31 = vpop.eup %1453  ;;  %v865_v32 = vadd.f32 1.0, %v1452_v27  ;;  %v1908_v33 = vadd.f32 %v745_v26, %v585_v24 }
 0x19b   : > { %1469 = vpow2.f32 %v1106_v28  ;;  %v748_v34 = vadd.f32 %v747_v30, %v587_v29  ;;  %v590_v35 = vpop.f32.mrb[16].mxu1  ;;  %v910_v36 = vmul.f32 %v1454_v31, %v1450_v23  ;;  %v1456_v37 = vpop.eup %1455 }
 0x19c   : > { %1471 = vrcp.f32 %v865_v32  ;;  %v591_v38 = vadd.f32 %v590_v35, %v1886_v10  ;;  %v592_v39 = vpop.f32.mrb[17].mxu1 }
 0x19d   : > { %v751_v40 = vpop.f32.mrb[16].mxu0  ;;  %v1458_v41 = vpop.eup %1457  ;;  %v1107_v42 = vmul.f32 -1.442695, %v748_v34  ;;  %v593_v43 = vadd.f32 %v592_v39, %v1888_v11  ;;  %1473 = vtanh.f32 %v728_v56 }
 0x19e   : > { %v753_v44 = vpop.f32.mrb[17].mxu0  ;;  %v1460_v46 = vpop.eup %1459  ;;  %v866_v45 = vadd.f32 1.0, %v1458_v41  ;;  %v1912_v47 = vadd.f32 %v751_v40, %v591_v38 }
 0x19f   : > { %1475 = vpow2.f32 %v1107_v42  ;;  %v754_v48 = vadd.f32 %v753_v44, %v593_v43  ;;  %v596_v49 = vpop.f32.mrb[18].mxu1  ;;  %v911_v50 = vmul.f32 %v1460_v46, %v1456_v37  ;;  %v1462_v51 = vpop.eup %1461 }
 0x1a0   : > { %1477 = vrcp.f32 %v866_v45  ;;  %v597_v52 = vadd.f32 %v596_v49, %v1886_v10  ;;  %v598_v53 = vpop.f32.mrb[19].mxu1 }
 0x1a1   : > { %v757_v54 = vpop.f32.mrb[18].mxu0  ;;  %v1464_v55 = vpop.eup %1463  ;;  %v1108_v57 = vmul.f32 -1.442695, %v754_v48  ;;  %v599_v58 = vadd.f32 %v598_v53, %v1888_v11  ;;  %v1303_v60 = vpack.c.bf16 %v911_v50, %v910_v36  ;;  %1479 = vtanh.f32 %v734_v4 }
 0x1a2   : > { %v759_v59 = vpop.f32.mrb[19].mxu0  ;;  %v1466_v56 = vpop.eup %1465  ;;  %v867_v61 = vadd.f32 1.0, %v1464_v55  ;;  %v1916_v62 = vadd.f32 %v757_v54, %v597_v52 }
 0x1a3   : > { %1481 = vpow2.f32 %v1108_v57  ;;  %v760_v63 = vadd.f32 %v759_v59, %v599_v58  ;;  %v602_v0 = vpop.f32.mrb[20].mxu1  ;;  %1304 = vmatpush3.bf16.xpose.msra.mxu1 %v1303_v60  ;;  %v912_v2 = vmul.f32 %v1466_v56, %v1462_v51  ;;  %v1468_v3 = vpop.eup %1467 }
 0x1a4   : > { %1483 = vrcp.f32 %v867_v61  ;;  %v603_v8 = vadd.f32 %v602_v0, %v1886_v10  ;;  %v604_v9 = vpop.f32.mrb[21].mxu1  ;;  %1305 = vmatprep.subr.bf16.mxu1 %v1641_v1 }
 0x1a5   : > { %v763_v12 = vpop.f32.mrb[20].mxu0  ;;  %v1470_v13 = vpop.eup %1469  ;;  %v1109_v14 = vmul.f32 -1.442695, %v760_v63  ;;  %v605_v4 = vadd.f32 %v604_v9, %v1888_v11  ;;  %1485 = vtanh.f32 %v1904_v20 }
 0x1a6   : > { %v765_v15 = vpop.f32.mrb[21].mxu0  ;;  %v1472_v16 = vpop.eup %1471  ;;  %v868_v17 = vadd.f32 1.0, %v1470_v13  ;;  %v1922_v18 = vadd.f32 %v763_v12, %v603_v8 }
 0x1a7   : > { %1487 = vpow2.f32 %v1109_v14  ;;  %v766_v19 = vadd.f32 %v765_v15, %v605_v4  ;;  %v608_v21 = vpop.f32.mrb[22].mxu1  ;;  %v913_v22 = vmul.f32 %v1472_v16, %v1468_v3  ;;  %v1474_v23 = vpop.eup %1473 }
 0x1a8   : > { %1489 = vrcp.f32 %v868_v17  ;;  %v609_v24 = vadd.f32 %v608_v21, %v1886_v10  ;;  %v610_v25 = vpop.f32.mrb[23].mxu1 }
 0x1a9   : > { %v769_v26 = vpop.f32.mrb[22].mxu0  ;;  %v1476_v27 = vpop.eup %1475  ;;  %v1110_v28 = vmul.f32 -1.442695, %v766_v19  ;;  %v611_v29 = vadd.f32 %v610_v25, %v1888_v11  ;;  %v1306_v31 = vpack.c.bf16 %v913_v22, %v912_v2  ;;  %1491 = vtanh.f32 %v1908_v33 }
 0x1aa   : > { %v771_v30 = vpop.f32.mrb[23].mxu0  ;;  %v1478_v20 = vpop.eup %1477  ;;  %v869_v32 = vadd.f32 1.0, %v1476_v27  ;;  %v1927_v34 = vadd.f32 %v769_v26, %v609_v24 }
 0x1ab   : > { %1493 = vpow2.f32 %v1110_v28  ;;  %v772_v35 = vadd.f32 %v771_v30, %v611_v29  ;;  %v614_v36 = vpop.f32.mrb[24].mxu1  ;;  %1307 = vmatpush3.bf16.xpose.msra.mxu1 %v1306_v31  ;;  %v914_v37 = vmul.f32 %v1478_v20, %v1474_v23  ;;  %v1480_v38 = vpop.eup %1479 }
 0x1ac   : > { %1495 = vrcp.f32 %v869_v32  ;;  %v615_v39 = vadd.f32 %v614_v36, %v1886_v10  ;;  %v616_v40 = vpop.f32.mrb[25].mxu1  ;;  %1308 = vmatprep.subr.bf16.mxu1 %v1641_v1 }
 0x1ad   : > { %v775_v41 = vpop.f32.mrb[24].mxu0  ;;  %v1482_v42 = vpop.eup %1481  ;;  %v1111_v43 = vmul.f32 -1.442695, %v772_v35  ;;  %v617_v33 = vadd.f32 %v616_v40, %v1888_v11  ;;  %1497 = vtanh.f32 %v1912_v47 }
 0x1ae   : > { %v777_v44 = vpop.f32.mrb[25].mxu0  ;;  %v1484_v46 = vpop.eup %1483  ;;  %v870_v45 = vadd.f32 1.0, %v1482_v42  ;;  %v1933_v48 = vadd.f32 %v775_v41, %v615_v39 }
 0x1af   : > { %1499 = vpow2.f32 %v1111_v43  ;;  %v778_v49 = vadd.f32 %v777_v44, %v617_v33  ;;  %v620_v50 = vpop.f32.mrb[26].mxu1  ;;  %v915_v51 = vmul.f32 %v1484_v46, %v1480_v38  ;;  %v1486_v52 = vpop.eup %1485 }
 0x1b0   : > { %1501 = vrcp.f32 %v870_v45  ;;  %v621_v53 = vadd.f32 %v620_v50, %v1886_v10  ;;  %v622_v54 = vpop.f32.mrb[27].mxu1 }
 0x1b1   : > { %v781_v55 = vpop.f32.mrb[26].mxu0  ;;  %v1488_v57 = vpop.eup %1487  ;;  %v1112_v58 = vmul.f32 -1.442695, %v778_v49  ;;  %v623_v59 = vadd.f32 %v622_v54, %v1888_v11  ;;  %v1309_v56 = vpack.c.bf16 %v915_v51, %v914_v37  ;;  %1503 = vtanh.f32 %v1916_v62 }
 0x1b2   : > { %v783_v60 = vpop.f32.mrb[27].mxu0  ;;  %v1490_v47 = vpop.eup %1489  ;;  %v871_v61 = vadd.f32 1.0, %v1488_v57  ;;  %v782_v63 = vadd.f32 %v781_v55, %v621_v53 }
 0x1b3   : > { %1505 = vpow2.f32 %v1112_v58  ;;  %v784_v0 = vadd.f32 %v783_v60, %v623_v59  ;;  %v626_v2 = vpop.f32.mrb[28].mxu1  ;;  %1310 = vmatpush3.bf16.xpose.msra.mxu1 %v1309_v56  ;;  %v916_v3 = vmul.f32 %v1490_v47, %v1486_v52  ;;  %v1492_v8 = vpop.eup %1491 }
 0x1b4   : > { %1507 = vrcp.f32 %v871_v61  ;;  %v627_v9 = vadd.f32 %v626_v2, %v1886_v10  ;;  %v628_v12 = vpop.f32.mrb[29].mxu1  ;;  %1311 = vmatprep.subr.bf16.mxu1 %v1641_v1 }
 0x1b5   : > { %v787_v13 = vpop.f32.mrb[28].mxu0  ;;  %v1494_v14 = vpop.eup %1493  ;;  %v1113_v4 = vmul.f32 -1.442695, %v784_v0  ;;  %v629_v15 = vadd.f32 %v628_v12, %v1888_v11  ;;  %1509 = vtanh.f32 %v1922_v18  ;;  %v926_v12 = vld [vmem:[%s1978_s3] sm:$0x1] }
 0x1b6   : > { %v789_v62 = vpop.f32.mrb[29].mxu0  ;;  %v1496_v16 = vpop.eup %1495  ;;  %v872_v17 = vadd.f32 1.0, %v1494_v14  ;;  %v788_v19 = vadd.f32 %v787_v13, %v627_v9  ;;  %v1009_v13 = vand.u32 127, %v466_v5  ;;  %v1010_v14 = vstv %s1116_s14 }
 0x1b7   : > { %1511 = vpow2.f32 %v1113_v4  ;;  %v790_v21 = vadd.f32 %v789_v62, %v629_v15  ;;  %v632_v22 = vpop.f32.mrb[30].mxu1  ;;  %v917_v23 = vmul.f32 %v1496_v16, %v1492_v8  ;;  %v1498_v24 = vpop.eup %1497 }
 0x1b8   : > { %1513 = vrcp.f32 %v872_v17  ;;  %v633_v25 = vadd.f32 %v632_v22, %v1886_v10  ;;  %v634_v26 = vpop.f32.mrb[31].mxu1  ;;  %v931_v4 = vpop.permute.xlu0 %930  ;;  %v1011_v15 = vadd.s32 %v1010_v14, %v1009_v13 }
 0x1b9   : > { %v793_v27 = vpop.f32.mrb[30].mxu0  ;;  %v1500_v28 = vpop.eup %1499  ;;  %v1114_v29 = vmul.f32 -1.442695, %v790_v21  ;;  %v635_v30 = vadd.f32 %v634_v26, %v1888_v11  ;;  %v1312_v20 = vpack.c.bf16 %v917_v23, %v916_v3  ;;  %1515 = vtanh.f32 %v1927_v34 }
 0x1ba   : > { %v795_v31 = vpop.f32.mrb[31].mxu0  ;;  %v1502_v32 = vpop.eup %1501  ;;  %v873_v18 = vadd.f32 1.0, %v1500_v28  ;;  %v794_v35 = vadd.f32 %v793_v27, %v633_v25  ;;  %vm1012_vm1 = vcmp.lt.s32.totalorder %v1011_v15, 300 }
 0x1bb   : > { %1517 = vpow2.f32 %v1114_v29  ;;  %v796_v36 = vadd.f32 %v795_v31, %v635_v30  ;;  %1313 = vmatpush3.bf16.xpose.msra.mxu1 %v1312_v20  ;;  %v918_v37 = vmul.f32 %v1502_v32, %v1498_v24  ;;  %v1504_v38 = vpop.eup %1503 }
 0x1bc   : > { %1519 = vrcp.f32 %v873_v18  ;;  %1314 = vmatprep.subr.bf16.mxu1 %v1641_v1 }
 0x1bd   : > { %v1506_v10 = vpop.eup %1505  ;;  %v1115_v39 = vmul.f32 -1.442695, %v796_v36  ;;  %1521 = vtanh.f32 %v1933_v48 }
 0x1be   : > { %v1508_v40 = vpop.eup %1507  ;;  %v874_v11 = vadd.f32 1.0, %v1506_v10 }
 0x1bf   : > { %1523 = vpow2.f32 %v1115_v39  ;;  %v919_v41 = vmul.f32 %v1508_v40, %v1504_v38  ;;  %v1510_v42 = vpop.eup %1509 }
 0x1c0   : > { %1525 = vrcp.f32 %v874_v11 }
 0x1c1   : > { %v1512_v34 = vpop.eup %1511  ;;  %v1315_v43 = vpack.c.bf16 %v919_v41, %v918_v37  ;;  %1527 = vtanh.f32 %v782_v63 }
 0x1c2   : > { %v1514_v33 = vpop.eup %1513  ;;  %v875_v44 = vadd.f32 1.0, %v1512_v34 }
 0x1c3   : > { %1316 = vmatpush3.bf16.xpose.msra.mxu1 %v1315_v43  ;;  %v920_v46 = vmul.f32 %v1514_v33, %v1510_v42  ;;  %v1516_v45 = vpop.eup %1515 }
 0x1c4   : > { %1529 = vrcp.f32 %v875_v44  ;;  %1317 = vmatprep.subr.bf16.mxu1 %v1641_v1 }
 0x1c5   : > { %v1518_v49 = vpop.eup %1517  ;;  %1531 = vtanh.f32 %v788_v19 }
 0x1c6   : > { %v1520_v50 = vpop.eup %1519  ;;  %v876_v51 = vadd.f32 1.0, %v1518_v49 }
 0x1c7   : > { %v921_v48 = vmul.f32 %v1520_v50, %v1516_v45  ;;  %v1522_v52 = vpop.eup %1521 }
 0x1c8   : > { %1533 = vrcp.f32 %v876_v51 }
 0x1c9   : > { %v1524_v53 = vpop.eup %1523  ;;  %v1318_v54 = vpack.c.bf16 %v921_v48, %v920_v46  ;;  %1535 = vtanh.f32 %v794_v35 }
 0x1ca   : > { %v1526_v55 = vpop.eup %1525  ;;  %v877_v57 = vadd.f32 1.0, %v1524_v53 }
 0x1cb   : > { %1319 = vmatpush3.bf16.xpose.msra.mxu1 %v1318_v54  ;;  %v922_v58 = vmul.f32 %v1526_v55, %v1522_v52  ;;  %v1528_v59 = vpop.eup %1527 }
 0x1cc   : > { %1537 = vrcp.f32 %v877_v57  ;;  %1320 = vmatprep.subr.bf16.mxu1 %v1641_v1 }
 0x1ce   : > { %v1530_v60 = vpop.eup %1529 }
 0x1cf   : > { %v923_v56 = vmul.f32 %v1530_v60, %v1528_v59  ;;  %v1532_v47 = vpop.eup %1531 }
 0x1d1   : > { %v1321_v61 = vpack.c.bf16 %v923_v56, %v922_v58 }
 0x1d2   : > { %v1534_v63 = vpop.eup %1533 }
 0x1d3   : > { %1322 = vmatpush3.bf16.xpose.msra.mxu1 %v1321_v61  ;;  %v924_v0 = vmul.f32 %v1534_v63, %v1532_v47  ;;  %v1536_v2 = vpop.eup %1535 }
 0x1d4   : > { %1323 = vmatprep.subr.bf16.mxu1 %v1641_v1  ;;  %v936_v1 = vrot.slane %v931_v4, %v468_v7 }
 0x1d6   : > { %v1538_v3 = vpop.eup %1537 }
 0x1d7   : > { %v925_v8 = vmul.f32 %v1538_v3, %v1536_v2 }
 0x1d9   : > { %v1324_v9 = vpack.c.bf16 %v925_v8, %v924_v0 }
 0x1db   : > { %1325 = vmatpush3.bf16.xpose.msra.mxu1 %v1324_v9 }
 0x1e2   : > { %1172 = vmatmul.mubr.f32.vlgmr.msra.gmra.mrb[32].mxu1 %v926_v12 }
 0x2b5   : > { %v1003_v62 = vpop.f32.mrb[32].mxu1 }
 0x2b6   : > { %v1004_v16 = vadd.f32 %v1003_v62, %v936_v1  ;;  %v1173_v17 = vpop.f32.mrb[33].mxu1 }
 0x2b8   : > { %v1013_v19 = vsel %vm1012_vm1, %v1004_v16, -1e+30 }
 0x2b9   : > { %1014 = vst [vmem:[%s271_s18] sm:$0x1] %v1013_v19 }
 0x2ba PF: > { %p18_p6 = scmp.ge.s32.totalorder %s1700_s24, 5   ;;  %s1993_s20 = smov %s1625_s21 }
 0x2bb   : > { %s1994_s21 = smov %s1629_s22  ;;  %s1995_s22 = smov %s1710_s27 }
 0x2bc   : > { %s1996_s23 = smov %s1700_s24  ;;  %20 = sbr.rel (!%p18_p6) target bundleno = 7 (0x7), region = 84 }
 0x2c3   :  { %1032 = vsyncpa [#allocation4], 1 }
 0x2c4   :  { %1034 = vsyncpa [#allocation4 + $0x1], 1 }
 0x2c5   :  { %1035 = vsyncpa [#allocation6], 1 }

</bundles_post_ra>
